<compile_context>
chip_gen: v7x
topology: tpu7x:2x2x1
jax: 0.10.0
libtpu: 0.0.40
codegen_flags: <defaults>
</compile_context>

<pallas_src>
from functools import partial

import numpy as np
import jax
import jax.numpy as jnp
from jax import lax
from jax.experimental import pallas as pl
from jax.experimental.pallas import tpu as pltpu


# --------------------------------------------------------------------------
# Fused EncoderLayer kernel (one pallas_call per forward)
# --------------------------------------------------------------------------

def _encoder_layer_kernel(x_ref, mask_ref, npm_ref,
                          wqkv_ref, bqkv_ref,
                          wfc_ref, bfc_ref, ln1_g_ref, ln1_b_ref,
                          w1_ref, b1_ref, w2_ref, b2_ref,
                          ln2_g_ref, ln2_b_ref,
                          out_ref, attn_ref,
                          *, n_head, d_k, d_v, temperature, eps):
    x = x_ref[0]                                   # (L, D) f32
    mask = mask_ref[0]                             # (L, L) f32, 1.0 = masked key
    npm = npm_ref[0]                               # (L, 1) f32, 1.0 = valid query

    def layer_norm(y, g_ref, b_ref):
        mean = jnp.mean(y, axis=-1, keepdims=True)
        var = jnp.mean((y - mean) ** 2, axis=-1, keepdims=True)   # biased, like torch LN
        return (y - mean) * lax.rsqrt(var + eps) * g_ref[...] + b_ref[...]

    def matmul_bf16(a, w_ref, b_ref):
        # bf16 operands, f32 MXU accumulation.
        return jnp.dot(a.astype(jnp.bfloat16), w_ref[...],
                       preferred_element_type=jnp.float32) + b_ref[...]

    # ---- fused Q/K/V projection: one (L,D) x (D, H*(2dk+dv)) matmul
    qkv = matmul_bf16(x, wqkv_ref, bqkv_ref)       # (L, H*(2dk+dv)) f32
    q_all = qkv[:, :n_head * d_k]
    k_all = qkv[:, n_head * d_k:2 * n_head * d_k]
    v_all = qkv[:, 2 * n_head * d_k:]

    neg = mask * 1e30                              # finite masked_fill (no -inf -> no NaN)
    inv_temp = 1.0 / temperature

    heads = []
    for h in range(n_head):                        # static unroll; n_head is small
        q = q_all[:, h * d_k:(h + 1) * d_k].astype(jnp.bfloat16)
        k = k_all[:, h * d_k:(h + 1) * d_k].astype(jnp.bfloat16)
        v = v_all[:, h * d_v:(h + 1) * d_v].astype(jnp.bfloat16)
        s = jnp.einsum("qd,kd->qk", q, k,
                       preferred_element_type=jnp.float32) * inv_temp
        s = s - neg
        s = s - jnp.max(s, axis=-1, keepdims=True)
        e = jnp.exp(s)                                               # f32 EUP
        p = e * pl.reciprocal(jnp.sum(e, axis=-1, keepdims=True), approx=True)
        attn_ref[0, h, :, :] = p
        heads.append(jnp.dot(p.astype(jnp.bfloat16), v,
                             preferred_element_type=jnp.float32))
    o = jnp.concatenate(heads, axis=-1)            # (L, n_head*d_v)

    # ---- fc + residual + LayerNorm + non-pad mask
    y = matmul_bf16(o, wfc_ref, bfc_ref) + x
    y = layer_norm(y, ln1_g_ref, ln1_b_ref)
    y = y * npm

    # ---- position-wise FFN (Conv1d k=1 == Linear) + residual + LN + non-pad mask
    hdn = jnp.maximum(matmul_bf16(y, w1_ref, b1_ref), 0.0)
    z = matmul_bf16(hdn, w2_ref, b2_ref) + y
    z = layer_norm(z, ln2_g_ref, ln2_b_ref)
    z = z * npm

    out_ref[0] = z.astype(out_ref.dtype)


def encoder_layer(params, enc_input, non_pad_mask, slf_attn_mask,
                  *, n_head, d_k, d_v, eps=1e-5):
    """Fused EncoderLayer forward.

    enc_input:     (bsz, L, d_model) f32
    non_pad_mask:  (bsz, L, 1) f32, 1.0 = valid query row
    slf_attn_mask: (bsz, L, L) f32, 1.0 = masked key position
    Returns (enc_output (bsz,L,d_model), attn (n_head*bsz, L, L)).
    """
    bsz, L, d_model = enc_input.shape
    temperature = float(np.power(d_k, 0.5))

    def w_spec(arr):                      # weights / biases / LN params (2-D, VMEM-resident)
        return pl.BlockSpec(arr.shape, lambda b: (0, 0))

    out, attn = pl.pallas_call(
        partial(_encoder_layer_kernel, n_head=n_head, d_k=d_k, d_v=d_v,
                temperature=temperature, eps=eps),
        out_shape=(jax.ShapeDtypeStruct((bsz, L, d_model), jnp.float32),
                   jax.ShapeDtypeStruct((bsz, n_head, L, L), jnp.float32)),
        grid=(bsz,),
        in_specs=[
            pl.BlockSpec((1, L, d_model), lambda b: (b, 0, 0)),
            pl.BlockSpec((1, L, L), lambda b: (b, 0, 0)),
            pl.BlockSpec((1, L, 1), lambda b: (b, 0, 0)),
            w_spec(params["wqkv"]), w_spec(params["bqkv"]),
            w_spec(params["wfc"]), w_spec(params["bfc"]),
            w_spec(params["ln1_g"]), w_spec(params["ln1_b"]),
            w_spec(params["w1"]), w_spec(params["b1"]),
            w_spec(params["w2"]), w_spec(params["b2"]),
            w_spec(params["ln2_g"]), w_spec(params["ln2_b"]),
        ],
        out_specs=(
            pl.BlockSpec((1, L, d_model), lambda b: (b, 0, 0)),
            pl.BlockSpec((1, n_head, L, L), lambda b: (b, 0, 0, 0)),
        ),
        compiler_params=pltpu.CompilerParams(
            dimension_semantics=("parallel",)),
    )(enc_input, slf_attn_mask, non_pad_mask,
      params["wqkv"], params["bqkv"],
      params["wfc"], params["bfc"], params["ln1_g"], params["ln1_b"],
      params["w1"], params["b1"], params["w2"], params["b2"],
      params["ln2_g"], params["ln2_b"])

    # Match PyTorch layout: attn is (n_head*bsz, len_q, len_k), head-major.
    attn = jnp.transpose(attn, (1, 0, 2, 3)).reshape(n_head * bsz, L, L)
    return out, attn


# --------------------------------------------------------------------------
# Pure-JAX reference (same bf16 matmul precision) for an in-script sanity check
# --------------------------------------------------------------------------

def encoder_layer_ref(params, x, non_pad_mask, slf_attn_mask,
                      *, n_head, d_k, d_v, eps=1e-5):
    bsz, L, _ = x.shape
    temp = float(np.power(d_k, 0.5))

    def mm(a, w, b):
        return jnp.dot(a.astype(jnp.bfloat16), w,
                       preferred_element_type=jnp.float32) + b

    def ln(y, g, b):
        mu = jnp.mean(y, -1, keepdims=True)
        var = jnp.mean((y - mu) ** 2, -1, keepdims=True)
        return (y - mu) * lax.rsqrt(var + eps) * g + b

    outs, attns = [], []
    for b in range(bsz):
        xb, maskb, npmb = x[b], slf_attn_mask[b], non_pad_mask[b]
        qkv = mm(xb, params["wqkv"], params["bqkv"])
        q_all = qkv[:, :n_head * d_k]
        k_all = qkv[:, n_head * d_k:2 * n_head * d_k]
        v_all = qkv[:, 2 * n_head * d_k:]
        heads, battn = [], []
        for h in range(n_head):
            q = q_all[:, h * d_k:(h + 1) * d_k].astype(jnp.bfloat16)
            k = k_all[:, h * d_k:(h + 1) * d_k].astype(jnp.bfloat16)
            v = v_all[:, h * d_v:(h + 1) * d_v].astype(jnp.bfloat16)
            s = jnp.einsum("qd,kd->qk", q, k,
                           preferred_element_type=jnp.float32) / temp - maskb * 1e30
            p = jax.nn.softmax(s, axis=-1)
            battn.append(p)
            heads.append(jnp.dot(p.astype(jnp.bfloat16), v,
                                 preferred_element_type=jnp.float32))
        o = jnp.concatenate(heads, -1)
        y = ln(mm(o, params["wfc"], params["bfc"]) + xb,
               params["ln1_g"], params["ln1_b"]) * npmb
        hdn = jnp.maximum(mm(y, params["w1"], params["b1"]), 0.0)
        z = ln(mm(hdn, params["w2"], params["b2"]) + y,
               params["ln2_g"], params["ln2_b"]) * npmb
        outs.append(z)
        attns.append(jnp.stack(battn))
    out = jnp.stack(outs)
    attn = jnp.transpose(jnp.stack(attns), (1, 0, 2, 3)).reshape(n_head * bsz, L, L)
    return out, attn


# --------------------------------------------------------------------------
# Deterministic parameter init (shapes follow the module __init__)
# --------------------------------------------------------------------------

def init_params(key, d_model, d_inner, n_head, d_k, d_v):
    keys = iter(jax.random.split(key, 16))

    def nrm(shape, std):
        return std * jax.random.normal(next(keys), shape, dtype=jnp.float32)

    w_qs = nrm((d_model, n_head * d_k), np.sqrt(2.0 / (d_model + d_k)))
    w_ks = nrm((d_model, n_head * d_k), np.sqrt(2.0 / (d_model + d_k)))
    w_vs = nrm((d_model, n_head * d_v), np.sqrt(2.0 / (d_model + d_v)))
    b_qs = nrm((n_head * d_k,), 0.02)
    b_ks = nrm((n_head * d_k,), 0.02)
    b_vs = nrm((n_head * d_v,), 0.02)

    return {
        # fused QKV weight, bf16-streamed
        "wqkv": jnp.concatenate([w_qs, w_ks, w_vs], axis=1).astype(jnp.bfloat16),
        "bqkv": jnp.concatenate([b_qs, b_ks, b_vs])[None, :],
        "wfc": nrm((n_head * d_v, d_model),
                   np.sqrt(2.0 / (n_head * d_v + d_model))).astype(jnp.bfloat16),
        "bfc": nrm((d_model,), 0.02)[None, :],
        "ln1_g": jnp.ones((1, d_model), jnp.float32),
        "ln1_b": jnp.zeros((1, d_model), jnp.float32),
        # PositionwiseFeedForward: Conv1d(k=1) weights stored as (in, out)
        "w1": nrm((d_model, d_inner), np.sqrt(2.0 / (d_model + d_inner))).astype(jnp.bfloat16),
        "b1": nrm((d_inner,), 0.02)[None, :],
        "w2": nrm((d_inner, d_model), np.sqrt(2.0 / (d_model + d_inner))).astype(jnp.bfloat16),
        "b2": nrm((d_model,), 0.02)[None, :],
        "ln2_g": jnp.ones((1, d_model), jnp.float32),
        "ln2_b": jnp.zeros((1, d_model), jnp.float32),
    }


# --------------------------------------------------------------------------
# Main
# --------------------------------------------------------------------------

if __name__ == "__main__":
    D_MODEL, D_INNER = 256, 512
    N_HEAD, D_K, D_V = 4, 64, 64
    BSZ, L = 2, 16
    lengths = [16, 12]          # valid rows per batch element (rest are padding)

    key = jax.random.PRNGKey(0)
    k_param, k_in = jax.random.split(key)
    params = init_params(k_param, D_MODEL, D_INNER, N_HEAD, D_K, D_V)

    enc_input = jax.random.normal(k_in, (BSZ, L, D_MODEL), dtype=jnp.float32)

    lens = jnp.asarray(lengths, dtype=jnp.int32)[:, None]                 # (BSZ, 1)
    key_pad = jnp.arange(L)[None, :] >= lens                              # True = padded key
    slf_attn_mask = jnp.broadcast_to(key_pad[:, None, :],
                                     (BSZ, L, L)).astype(jnp.float32)     # 1.0 = masked
    non_pad_mask = (jnp.arange(L)[None, :] < lens).astype(jnp.float32)[:, :, None]

    fwd = jax.jit(partial(encoder_layer, n_head=N_HEAD, d_k=D_K, d_v=D_V))
    enc_out, attn = fwd(params, enc_input, non_pad_mask, slf_attn_mask)
    enc_out, attn = jax.block_until_ready((enc_out, attn))

    assert enc_out.shape == (BSZ, L, D_MODEL), enc_out.shape
    assert attn.shape == (N_HEAD * BSZ, L, L), attn.shape
    assert bool(jnp.isfinite(enc_out).all())
    assert bool(jnp.isfinite(attn).all())

    ref_out, ref_attn = encoder_layer_ref(params, enc_input, non_pad_mask,
                                          slf_attn_mask, n_head=N_HEAD,
                                          d_k=D_K, d_v=D_V)
    assert float(jnp.max(jnp.abs(enc_out - ref_out))) < 5e-2
    assert float(jnp.max(jnp.abs(attn - ref_attn))) < 2e-2

    print("KERNEL_OK")
</pallas_src>

<mosaic_0001>
module attributes {stable_mosaic.version = 11 : i64} {
  func.func @_encoder_layer_kernel(%arg0: i32, %arg1: memref<1x16x256xf32, #tpu.memory_space<vmem>>, %arg2: memref<1x16x16xf32, #tpu.memory_space<vmem>>, %arg3: memref<1x16x1xf32, #tpu.memory_space<vmem>>, %arg4: memref<256x768xbf16, #tpu.memory_space<vmem>>, %arg5: memref<1x768xf32, #tpu.memory_space<vmem>>, %arg6: memref<256x256xbf16, #tpu.memory_space<vmem>>, %arg7: memref<1x256xf32, #tpu.memory_space<vmem>>, %arg8: memref<1x256xf32, #tpu.memory_space<vmem>>, %arg9: memref<1x256xf32, #tpu.memory_space<vmem>>, %arg10: memref<256x512xbf16, #tpu.memory_space<vmem>>, %arg11: memref<1x512xf32, #tpu.memory_space<vmem>>, %arg12: memref<512x256xbf16, #tpu.memory_space<vmem>>, %arg13: memref<1x256xf32, #tpu.memory_space<vmem>>, %arg14: memref<1x256xf32, #tpu.memory_space<vmem>>, %arg15: memref<1x256xf32, #tpu.memory_space<vmem>>, %arg16: memref<1x16x256xf32, #tpu.memory_space<vmem>>, %arg17: memref<1x4x16x16xf32, #tpu.memory_space<vmem>>) attributes {dimension_semantics = [#tpu.dimension_semantics<parallel>], iteration_bounds = array<i64: 2>, scalar_prefetch = 0 : i64, scratch_operands = 0 : i64, tpu.core_type = #tpu.core_type<tc>, window_params = [{transform_indices = @transform_0, window_bounds = array<i64: 1, 16, 256>}, {transform_indices = @transform_1, window_bounds = array<i64: 1, 16, 16>}, {transform_indices = @transform_2, window_bounds = array<i64: 1, 16, 1>}, {pipeline_mode = #tpu.pipeline_mode<synchronous>, transform_indices = @transform_3, window_bounds = array<i64: 256, 768>}, {pipeline_mode = #tpu.pipeline_mode<synchronous>, transform_indices = @transform_4, window_bounds = array<i64: 1, 768>}, {pipeline_mode = #tpu.pipeline_mode<synchronous>, transform_indices = @transform_5, window_bounds = array<i64: 256, 256>}, {pipeline_mode = #tpu.pipeline_mode<synchronous>, transform_indices = @transform_6, window_bounds = array<i64: 1, 256>}, {pipeline_mode = #tpu.pipeline_mode<synchronous>, transform_indices = @transform_7, window_bounds = array<i64: 1, 256>}, {pipeline_mode = #tpu.pipeline_mode<synchronous>, transform_indices = @transform_8, window_bounds = array<i64: 1, 256>}, {pipeline_mode = #tpu.pipeline_mode<synchronous>, transform_indices = @transform_9, window_bounds = array<i64: 256, 512>}, {pipeline_mode = #tpu.pipeline_mode<synchronous>, transform_indices = @transform_10, window_bounds = array<i64: 1, 512>}, {pipeline_mode = #tpu.pipeline_mode<synchronous>, transform_indices = @transform_11, window_bounds = array<i64: 512, 256>}, {pipeline_mode = #tpu.pipeline_mode<synchronous>, transform_indices = @transform_12, window_bounds = array<i64: 1, 256>}, {pipeline_mode = #tpu.pipeline_mode<synchronous>, transform_indices = @transform_13, window_bounds = array<i64: 1, 256>}, {pipeline_mode = #tpu.pipeline_mode<synchronous>, transform_indices = @transform_14, window_bounds = array<i64: 1, 256>}, {transform_indices = @transform_15, window_bounds = array<i64: 1, 16, 256>}, {transform_indices = @transform_16, window_bounds = array<i64: 1, 4, 16, 16>}]} {
    %c0 = arith.constant 0 : index
    %c0_0 = arith.constant 0 : index
    %c0_1 = arith.constant 0 : index
    %0 = vector.load %arg1[%c0, %c0_0, %c0_1] : memref<1x16x256xf32, #tpu.memory_space<vmem>>, vector<1x16x256xf32>
    %1 = vector.shape_cast %0 : vector<1x16x256xf32> to vector<16x256xf32>
    %c0_2 = arith.constant 0 : index
    %c0_3 = arith.constant 0 : index
    %c0_4 = arith.constant 0 : index
    %2 = vector.load %arg2[%c0_2, %c0_3, %c0_4] : memref<1x16x16xf32, #tpu.memory_space<vmem>>, vector<1x16x16xf32>
    %3 = vector.shape_cast %2 : vector<1x16x16xf32> to vector<16x16xf32>
    %c0_5 = arith.constant 0 : index
    %c0_6 = arith.constant 0 : index
    %c0_7 = arith.constant 0 : index
    %4 = vector.load %arg3[%c0_5, %c0_6, %c0_7] : memref<1x16x1xf32, #tpu.memory_space<vmem>>, vector<1x16x1xf32>
    %5 = vector.shape_cast %4 : vector<1x16x1xf32> to vector<16x1xf32>
    %6 = arith.truncf %1 : vector<16x256xf32> to vector<16x256xbf16>
    %c0_8 = arith.constant 0 : index
    %c0_9 = arith.constant 0 : index
    %7 = vector.load %arg4[%c0_8, %c0_9] : memref<256x768xbf16, #tpu.memory_space<vmem>>, vector<256x768xbf16>
    %cst = arith.constant dense<0.000000e+00> : vector<16x768xf32>
    %8 = tpu.matmul %6, %7, %cst {dimension_numbers = #tpu.dot_dimension_numbers<[1], [0], [0], [1], [0, 0, 1, 1], [], []>} : vector<16x256xbf16>, vector<256x768xbf16>, vector<16x768xf32> -> vector<16x768xf32>
    %c0_10 = arith.constant 0 : index
    %c0_11 = arith.constant 0 : index
    %9 = vector.load %arg5[%c0_10, %c0_11] : memref<1x768xf32, #tpu.memory_space<vmem>>, vector<1x768xf32>
    %10 = vector.broadcast %9 : vector<1x768xf32> to vector<16x768xf32>
    %11 = arith.addf %8, %10 : vector<16x768xf32>
    %12 = vector.extract_strided_slice %11 {offsets = [0, 0], sizes = [16, 256], strides = [1, 1]} : vector<16x768xf32> to vector<16x256xf32>
    %13 = vector.extract_strided_slice %11 {offsets = [0, 256], sizes = [16, 256], strides = [1, 1]} : vector<16x768xf32> to vector<16x256xf32>
    %14 = vector.extract_strided_slice %11 {offsets = [0, 512], sizes = [16, 256], strides = [1, 1]} : vector<16x768xf32> to vector<16x256xf32>
    %cst_12 = arith.constant 1.000000e+30 : f32
    %15 = vector.broadcast %cst_12 : f32 to vector<16x16xf32>
    %16 = arith.mulf %3, %15 : vector<16x16xf32>
    %17 = vector.extract_strided_slice %12 {offsets = [0, 0], sizes = [16, 64], strides = [1, 1]} : vector<16x256xf32> to vector<16x64xf32>
    %18 = arith.truncf %17 : vector<16x64xf32> to vector<16x64xbf16>
    %19 = vector.extract_strided_slice %13 {offsets = [0, 0], sizes = [16, 64], strides = [1, 1]} : vector<16x256xf32> to vector<16x64xf32>
    %20 = arith.truncf %19 : vector<16x64xf32> to vector<16x64xbf16>
    %21 = vector.extract_strided_slice %14 {offsets = [0, 0], sizes = [16, 64], strides = [1, 1]} : vector<16x256xf32> to vector<16x64xf32>
    %22 = arith.truncf %21 : vector<16x64xf32> to vector<16x64xbf16>
    "tpu.trace_start"() <{level = 10 : i32, message = "qd,kd->qk"}> : () -> ()
    %cst_13 = arith.constant dense<0.000000e+00> : vector<16x16xf32>
    %23 = tpu.matmul %18, %20, %cst_13 {dimension_numbers = #tpu.dot_dimension_numbers<[1], [1], [0], [0], [0, 0, 1, 0], [], []>} : vector<16x64xbf16>, vector<16x64xbf16>, vector<16x16xf32> -> vector<16x16xf32>
    "tpu.trace_stop"() : () -> ()
    %cst_14 = arith.constant 1.250000e-01 : f32
    %24 = vector.broadcast %cst_14 : f32 to vector<16x16xf32>
    %25 = arith.mulf %23, %24 : vector<16x16xf32>
    %26 = arith.subf %25, %16 : vector<16x16xf32>
    %cst_15 = arith.constant dense<0xFF800000> : vector<16xf32>
    %27 = vector.multi_reduction <maximumf>, %26, %cst_15 [1] : vector<16x16xf32> to vector<16xf32>
    %28 = vector.shape_cast %27 : vector<16xf32> to vector<16x1xf32>
    %29 = vector.broadcast %28 : vector<16x1xf32> to vector<16x16xf32>
    %30 = arith.subf %26, %29 : vector<16x16xf32>
    %31 = math.exp %30 : vector<16x16xf32>
    %cst_16 = arith.constant dense<0.000000e+00> : vector<16xf32>
    %32 = vector.multi_reduction <add>, %31, %cst_16 [1] : vector<16x16xf32> to vector<16xf32>
    %33 = vector.shape_cast %32 : vector<16xf32> to vector<16x1xf32>
    %34 = tpu.reciprocal %33 {approx = true} : vector<16x1xf32> -> vector<16x1xf32>
    %35 = vector.broadcast %34 : vector<16x1xf32> to vector<16x16xf32>
    %36 = arith.mulf %31, %35 : vector<16x16xf32>
    %c0_17 = arith.constant 0 : index
    %c0_18 = arith.constant 0 : index
    %c0_19 = arith.constant 0 : index
    %c0_20 = arith.constant 0 : index
    %37 = vector.load %arg17[%c0_17, %c0_18, %c0_19, %c0_20] : memref<1x4x16x16xf32, #tpu.memory_space<vmem>>, vector<1x1x16x16xf32>
    %38 = vector.shape_cast %37 : vector<1x1x16x16xf32> to vector<16x16xf32>
    %39 = vector.shape_cast %36 : vector<16x16xf32> to vector<1x1x16x16xf32>
    tpu.vector_store %arg17[%c0_17, %c0_18, %c0_19, %c0_20], %39 {strides = array<i32>} : memref<1x4x16x16xf32, #tpu.memory_space<vmem>>, vector<1x1x16x16xf32>,
    %40 = arith.truncf %36 : vector<16x16xf32> to vector<16x16xbf16>
    %cst_21 = arith.constant dense<0.000000e+00> : vector<16x64xf32>
    %41 = tpu.matmul %40, %22, %cst_21 {dimension_numbers = #tpu.dot_dimension_numbers<[1], [0], [0], [1], [0, 0, 1, 1], [], []>} : vector<16x16xbf16>, vector<16x64xbf16>, vector<16x64xf32> -> vector<16x64xf32>
    %42 = vector.extract_strided_slice %12 {offsets = [0, 64], sizes = [16, 64], strides = [1, 1]} : vector<16x256xf32> to vector<16x64xf32>
    %43 = arith.truncf %42 : vector<16x64xf32> to vector<16x64xbf16>
    %44 = vector.extract_strided_slice %13 {offsets = [0, 64], sizes = [16, 64], strides = [1, 1]} : vector<16x256xf32> to vector<16x64xf32>
    %45 = arith.truncf %44 : vector<16x64xf32> to vector<16x64xbf16>
    %46 = vector.extract_strided_slice %14 {offsets = [0, 64], sizes = [16, 64], strides = [1, 1]} : vector<16x256xf32> to vector<16x64xf32>
    %47 = arith.truncf %46 : vector<16x64xf32> to vector<16x64xbf16>
    "tpu.trace_start"() <{level = 10 : i32, message = "qd,kd->qk"}> : () -> ()
    %cst_22 = arith.constant dense<0.000000e+00> : vector<16x16xf32>
    %48 = tpu.matmul %43, %45, %cst_22 {dimension_numbers = #tpu.dot_dimension_numbers<[1], [1], [0], [0], [0, 0, 1, 0], [], []>} : vector<16x64xbf16>, vector<16x64xbf16>, vector<16x16xf32> -> vector<16x16xf32>
    "tpu.trace_stop"() : () -> ()
    %cst_23 = arith.constant 1.250000e-01 : f32
    %49 = vector.broadcast %cst_23 : f32 to vector<16x16xf32>
    %50 = arith.mulf %48, %49 : vector<16x16xf32>
    %51 = arith.subf %50, %16 : vector<16x16xf32>
    %cst_24 = arith.constant dense<0xFF800000> : vector<16xf32>
    %52 = vector.multi_reduction <maximumf>, %51, %cst_24 [1] : vector<16x16xf32> to vector<16xf32>
    %53 = vector.shape_cast %52 : vector<16xf32> to vector<16x1xf32>
    %54 = vector.broadcast %53 : vector<16x1xf32> to vector<16x16xf32>
    %55 = arith.subf %51, %54 : vector<16x16xf32>
    %56 = math.exp %55 : vector<16x16xf32>
    %cst_25 = arith.constant dense<0.000000e+00> : vector<16xf32>
    %57 = vector.multi_reduction <add>, %56, %cst_25 [1] : vector<16x16xf32> to vector<16xf32>
    %58 = vector.shape_cast %57 : vector<16xf32> to vector<16x1xf32>
    %59 = tpu.reciprocal %58 {approx = true} : vector<16x1xf32> -> vector<16x1xf32>
    %60 = vector.broadcast %59 : vector<16x1xf32> to vector<16x16xf32>
    %61 = arith.mulf %56, %60 : vector<16x16xf32>
    %c0_26 = arith.constant 0 : index
    %c1 = arith.constant 1 : index
    %c0_27 = arith.constant 0 : index
    %c0_28 = arith.constant 0 : index
    %62 = vector.load %arg17[%c0_26, %c1, %c0_27, %c0_28] : memref<1x4x16x16xf32, #tpu.memory_space<vmem>>, vector<1x1x16x16xf32>
    %63 = vector.shape_cast %62 : vector<1x1x16x16xf32> to vector<16x16xf32>
    %64 = vector.shape_cast %61 : vector<16x16xf32> to vector<1x1x16x16xf32>
    tpu.vector_store %arg17[%c0_26, %c1, %c0_27, %c0_28], %64 {strides = array<i32>} : memref<1x4x16x16xf32, #tpu.memory_space<vmem>>, vector<1x1x16x16xf32>,
    %65 = arith.truncf %61 : vector<16x16xf32> to vector<16x16xbf16>
    %cst_29 = arith.constant dense<0.000000e+00> : vector<16x64xf32>
    %66 = tpu.matmul %65, %47, %cst_29 {dimension_numbers = #tpu.dot_dimension_numbers<[1], [0], [0], [1], [0, 0, 1, 1], [], []>} : vector<16x16xbf16>, vector<16x64xbf16>, vector<16x64xf32> -> vector<16x64xf32>
    %67 = vector.extract_strided_slice %12 {offsets = [0, 128], sizes = [16, 64], strides = [1, 1]} : vector<16x256xf32> to vector<16x64xf32>
    %68 = arith.truncf %67 : vector<16x64xf32> to vector<16x64xbf16>
    %69 = vector.extract_strided_slice %13 {offsets = [0, 128], sizes = [16, 64], strides = [1, 1]} : vector<16x256xf32> to vector<16x64xf32>
    %70 = arith.truncf %69 : vector<16x64xf32> to vector<16x64xbf16>
    %71 = vector.extract_strided_slice %14 {offsets = [0, 128], sizes = [16, 64], strides = [1, 1]} : vector<16x256xf32> to vector<16x64xf32>
    %72 = arith.truncf %71 : vector<16x64xf32> to vector<16x64xbf16>
    "tpu.trace_start"() <{level = 10 : i32, message = "qd,kd->qk"}> : () -> ()
    %cst_30 = arith.constant dense<0.000000e+00> : vector<16x16xf32>
    %73 = tpu.matmul %68, %70, %cst_30 {dimension_numbers = #tpu.dot_dimension_numbers<[1], [1], [0], [0], [0, 0, 1, 0], [], []>} : vector<16x64xbf16>, vector<16x64xbf16>, vector<16x16xf32> -> vector<16x16xf32>
    "tpu.trace_stop"() : () -> ()
    %cst_31 = arith.constant 1.250000e-01 : f32
    %74 = vector.broadcast %cst_31 : f32 to vector<16x16xf32>
    %75 = arith.mulf %73, %74 : vector<16x16xf32>
    %76 = arith.subf %75, %16 : vector<16x16xf32>
    %cst_32 = arith.constant dense<0xFF800000> : vector<16xf32>
    %77 = vector.multi_reduction <maximumf>, %76, %cst_32 [1] : vector<16x16xf32> to vector<16xf32>
    %78 = vector.shape_cast %77 : vector<16xf32> to vector<16x1xf32>
    %79 = vector.broadcast %78 : vector<16x1xf32> to vector<16x16xf32>
    %80 = arith.subf %76, %79 : vector<16x16xf32>
    %81 = math.exp %80 : vector<16x16xf32>
    %cst_33 = arith.constant dense<0.000000e+00> : vector<16xf32>
    %82 = vector.multi_reduction <add>, %81, %cst_33 [1] : vector<16x16xf32> to vector<16xf32>
    %83 = vector.shape_cast %82 : vector<16xf32> to vector<16x1xf32>
    %84 = tpu.reciprocal %83 {approx = true} : vector<16x1xf32> -> vector<16x1xf32>
    %85 = vector.broadcast %84 : vector<16x1xf32> to vector<16x16xf32>
    %86 = arith.mulf %81, %85 : vector<16x16xf32>
    %c0_34 = arith.constant 0 : index
    %c2 = arith.constant 2 : index
    %c0_35 = arith.constant 0 : index
    %c0_36 = arith.constant 0 : index
    %87 = vector.load %arg17[%c0_34, %c2, %c0_35, %c0_36] : memref<1x4x16x16xf32, #tpu.memory_space<vmem>>, vector<1x1x16x16xf32>
    %88 = vector.shape_cast %87 : vector<1x1x16x16xf32> to vector<16x16xf32>
    %89 = vector.shape_cast %86 : vector<16x16xf32> to vector<1x1x16x16xf32>
    tpu.vector_store %arg17[%c0_34, %c2, %c0_35, %c0_36], %89 {strides = array<i32>} : memref<1x4x16x16xf32, #tpu.memory_space<vmem>>, vector<1x1x16x16xf32>,
    %90 = arith.truncf %86 : vector<16x16xf32> to vector<16x16xbf16>
    %cst_37 = arith.constant dense<0.000000e+00> : vector<16x64xf32>
    %91 = tpu.matmul %90, %72, %cst_37 {dimension_numbers = #tpu.dot_dimension_numbers<[1], [0], [0], [1], [0, 0, 1, 1], [], []>} : vector<16x16xbf16>, vector<16x64xbf16>, vector<16x64xf32> -> vector<16x64xf32>
    %92 = vector.extract_strided_slice %12 {offsets = [0, 192], sizes = [16, 64], strides = [1, 1]} : vector<16x256xf32> to vector<16x64xf32>
    %93 = arith.truncf %92 : vector<16x64xf32> to vector<16x64xbf16>
    %94 = vector.extract_strided_slice %13 {offsets = [0, 192], sizes = [16, 64], strides = [1, 1]} : vector<16x256xf32> to vector<16x64xf32>
    %95 = arith.truncf %94 : vector<16x64xf32> to vector<16x64xbf16>
    %96 = vector.extract_strided_slice %14 {offsets = [0, 192], sizes = [16, 64], strides = [1, 1]} : vector<16x256xf32> to vector<16x64xf32>
    %97 = arith.truncf %96 : vector<16x64xf32> to vector<16x64xbf16>
    "tpu.trace_start"() <{level = 10 : i32, message = "qd,kd->qk"}> : () -> ()
    %cst_38 = arith.constant dense<0.000000e+00> : vector<16x16xf32>
    %98 = tpu.matmul %93, %95, %cst_38 {dimension_numbers = #tpu.dot_dimension_numbers<[1], [1], [0], [0], [0, 0, 1, 0], [], []>} : vector<16x64xbf16>, vector<16x64xbf16>, vector<16x16xf32> -> vector<16x16xf32>
    "tpu.trace_stop"() : () -> ()
    %cst_39 = arith.constant 1.250000e-01 : f32
    %99 = vector.broadcast %cst_39 : f32 to vector<16x16xf32>
    %100 = arith.mulf %98, %99 : vector<16x16xf32>
    %101 = arith.subf %100, %16 : vector<16x16xf32>
    %cst_40 = arith.constant dense<0xFF800000> : vector<16xf32>
    %102 = vector.multi_reduction <maximumf>, %101, %cst_40 [1] : vector<16x16xf32> to vector<16xf32>
    %103 = vector.shape_cast %102 : vector<16xf32> to vector<16x1xf32>
    %104 = vector.broadcast %103 : vector<16x1xf32> to vector<16x16xf32>
    %105 = arith.subf %101, %104 : vector<16x16xf32>
    %106 = math.exp %105 : vector<16x16xf32>
    %cst_41 = arith.constant dense<0.000000e+00> : vector<16xf32>
    %107 = vector.multi_reduction <add>, %106, %cst_41 [1] : vector<16x16xf32> to vector<16xf32>
    %108 = vector.shape_cast %107 : vector<16xf32> to vector<16x1xf32>
    %109 = tpu.reciprocal %108 {approx = true} : vector<16x1xf32> -> vector<16x1xf32>
    %110 = vector.broadcast %109 : vector<16x1xf32> to vector<16x16xf32>
    %111 = arith.mulf %106, %110 : vector<16x16xf32>
    %c0_42 = arith.constant 0 : index
    %c3 = arith.constant 3 : index
    %c0_43 = arith.constant 0 : index
    %c0_44 = arith.constant 0 : index
    %112 = vector.load %arg17[%c0_42, %c3, %c0_43, %c0_44] : memref<1x4x16x16xf32, #tpu.memory_space<vmem>>, vector<1x1x16x16xf32>
    %113 = vector.shape_cast %112 : vector<1x1x16x16xf32> to vector<16x16xf32>
    %114 = vector.shape_cast %111 : vector<16x16xf32> to vector<1x1x16x16xf32>
    tpu.vector_store %arg17[%c0_42, %c3, %c0_43, %c0_44], %114 {strides = array<i32>} : memref<1x4x16x16xf32, #tpu.memory_space<vmem>>, vector<1x1x16x16xf32>,
    %115 = arith.truncf %111 : vector<16x16xf32> to vector<16x16xbf16>
    %cst_45 = arith.constant dense<0.000000e+00> : vector<16x64xf32>
    %116 = tpu.matmul %115, %97, %cst_45 {dimension_numbers = #tpu.dot_dimension_numbers<[1], [0], [0], [1], [0, 0, 1, 1], [], []>} : vector<16x16xbf16>, vector<16x64xbf16>, vector<16x64xf32> -> vector<16x64xf32>
    %117 = tpu.concatenate %41, %66, %91, %116 in 1 : vector<16x64xf32>, vector<16x64xf32>, vector<16x64xf32>, vector<16x64xf32> -> vector<16x256xf32>
    %118 = arith.truncf %117 : vector<16x256xf32> to vector<16x256xbf16>
    %c0_46 = arith.constant 0 : index
    %c0_47 = arith.constant 0 : index
    %119 = vector.load %arg6[%c0_46, %c0_47] : memref<256x256xbf16, #tpu.memory_space<vmem>>, vector<256x256xbf16>
    %cst_48 = arith.constant dense<0.000000e+00> : vector<16x256xf32>
    %120 = tpu.matmul %118, %119, %cst_48 {dimension_numbers = #tpu.dot_dimension_numbers<[1], [0], [0], [1], [0, 0, 1, 1], [], []>} : vector<16x256xbf16>, vector<256x256xbf16>, vector<16x256xf32> -> vector<16x256xf32>
    %c0_49 = arith.constant 0 : index
    %c0_50 = arith.constant 0 : index
    %121 = vector.load %arg7[%c0_49, %c0_50] : memref<1x256xf32, #tpu.memory_space<vmem>>, vector<1x256xf32>
    %122 = vector.broadcast %121 : vector<1x256xf32> to vector<16x256xf32>
    %123 = arith.addf %120, %122 : vector<16x256xf32>
    %124 = arith.addf %123, %1 : vector<16x256xf32>
    %cst_51 = arith.constant dense<0.000000e+00> : vector<16xf32>
    %125 = vector.multi_reduction <add>, %124, %cst_51 [1] : vector<16x256xf32> to vector<16xf32>
    %126 = vector.shape_cast %125 : vector<16xf32> to vector<16x1xf32>
    %cst_52 = arith.constant 2.560000e+02 : f32
    %127 = vector.broadcast %cst_52 : f32 to vector<16x1xf32>
    %128 = arith.divf %126, %127 : vector<16x1xf32>
    %129 = vector.broadcast %128 : vector<16x1xf32> to vector<16x256xf32>
    %130 = arith.subf %124, %129 : vector<16x256xf32>
    %131 = arith.mulf %130, %130 : vector<16x256xf32>
    %cst_53 = arith.constant dense<0.000000e+00> : vector<16xf32>
    %132 = vector.multi_reduction <add>, %131, %cst_53 [1] : vector<16x256xf32> to vector<16xf32>
    %133 = vector.shape_cast %132 : vector<16xf32> to vector<16x1xf32>
    %cst_54 = arith.constant 2.560000e+02 : f32
    %134 = vector.broadcast %cst_54 : f32 to vector<16x1xf32>
    %135 = arith.divf %133, %134 : vector<16x1xf32>
    %136 = vector.broadcast %128 : vector<16x1xf32> to vector<16x256xf32>
    %137 = arith.subf %124, %136 : vector<16x256xf32>
    %cst_55 = arith.constant 9.99999974E-6 : f32
    %138 = vector.broadcast %cst_55 : f32 to vector<16x1xf32>
    %139 = arith.addf %135, %138 : vector<16x1xf32>
    %140 = math.rsqrt %139 : vector<16x1xf32>
    %141 = vector.broadcast %140 : vector<16x1xf32> to vector<16x256xf32>
    %142 = arith.mulf %137, %141 : vector<16x256xf32>
    %c0_56 = arith.constant 0 : index
    %c0_57 = arith.constant 0 : index
    %143 = vector.load %arg8[%c0_56, %c0_57] : memref<1x256xf32, #tpu.memory_space<vmem>>, vector<1x256xf32>
    %144 = vector.broadcast %143 : vector<1x256xf32> to vector<16x256xf32>
    %145 = arith.mulf %142, %144 : vector<16x256xf32>
    %c0_58 = arith.constant 0 : index
    %c0_59 = arith.constant 0 : index
    %146 = vector.load %arg9[%c0_58, %c0_59] : memref<1x256xf32, #tpu.memory_space<vmem>>, vector<1x256xf32>
    %147 = vector.broadcast %146 : vector<1x256xf32> to vector<16x256xf32>
    %148 = arith.addf %145, %147 : vector<16x256xf32>
    %149 = vector.broadcast %5 : vector<16x1xf32> to vector<16x256xf32>
    %150 = arith.mulf %148, %149 : vector<16x256xf32>
    %151 = arith.truncf %150 : vector<16x256xf32> to vector<16x256xbf16>
    %c0_60 = arith.constant 0 : index
    %c0_61 = arith.constant 0 : index
    %152 = vector.load %arg10[%c0_60, %c0_61] : memref<256x512xbf16, #tpu.memory_space<vmem>>, vector<256x512xbf16>
    %cst_62 = arith.constant dense<0.000000e+00> : vector<16x512xf32>
    %153 = tpu.matmul %151, %152, %cst_62 {dimension_numbers = #tpu.dot_dimension_numbers<[1], [0], [0], [1], [0, 0, 1, 1], [], []>} : vector<16x256xbf16>, vector<256x512xbf16>, vector<16x512xf32> -> vector<16x512xf32>
    %c0_63 = arith.constant 0 : index
    %c0_64 = arith.constant 0 : index
    %154 = vector.load %arg11[%c0_63, %c0_64] : memref<1x512xf32, #tpu.memory_space<vmem>>, vector<1x512xf32>
    %155 = vector.broadcast %154 : vector<1x512xf32> to vector<16x512xf32>
    %156 = arith.addf %153, %155 : vector<16x512xf32>
    %cst_65 = arith.constant 0.000000e+00 : f32
    %157 = vector.broadcast %cst_65 : f32 to vector<16x512xf32>
    %158 = arith.maximumf %156, %157 : vector<16x512xf32>
    %159 = arith.truncf %158 : vector<16x512xf32> to vector<16x512xbf16>
    %c0_66 = arith.constant 0 : index
    %c0_67 = arith.constant 0 : index
    %160 = vector.load %arg12[%c0_66, %c0_67] : memref<512x256xbf16, #tpu.memory_space<vmem>>, vector<512x256xbf16>
    %cst_68 = arith.constant dense<0.000000e+00> : vector<16x256xf32>
    %161 = tpu.matmul %159, %160, %cst_68 {dimension_numbers = #tpu.dot_dimension_numbers<[1], [0], [0], [1], [0, 0, 1, 1], [], []>} : vector<16x512xbf16>, vector<512x256xbf16>, vector<16x256xf32> -> vector<16x256xf32>
    %c0_69 = arith.constant 0 : index
    %c0_70 = arith.constant 0 : index
    %162 = vector.load %arg13[%c0_69, %c0_70] : memref<1x256xf32, #tpu.memory_space<vmem>>, vector<1x256xf32>
    %163 = vector.broadcast %162 : vector<1x256xf32> to vector<16x256xf32>
    %164 = arith.addf %161, %163 : vector<16x256xf32>
    %165 = arith.addf %164, %150 : vector<16x256xf32>
    %cst_71 = arith.constant dense<0.000000e+00> : vector<16xf32>
    %166 = vector.multi_reduction <add>, %165, %cst_71 [1] : vector<16x256xf32> to vector<16xf32>
    %167 = vector.shape_cast %166 : vector<16xf32> to vector<16x1xf32>
    %cst_72 = arith.constant 2.560000e+02 : f32
    %168 = vector.broadcast %cst_72 : f32 to vector<16x1xf32>
    %169 = arith.divf %167, %168 : vector<16x1xf32>
    %170 = vector.broadcast %169 : vector<16x1xf32> to vector<16x256xf32>
    %171 = arith.subf %165, %170 : vector<16x256xf32>
    %172 = arith.mulf %171, %171 : vector<16x256xf32>
    %cst_73 = arith.constant dense<0.000000e+00> : vector<16xf32>
    %173 = vector.multi_reduction <add>, %172, %cst_73 [1] : vector<16x256xf32> to vector<16xf32>
    %174 = vector.shape_cast %173 : vector<16xf32> to vector<16x1xf32>
    %cst_74 = arith.constant 2.560000e+02 : f32
    %175 = vector.broadcast %cst_74 : f32 to vector<16x1xf32>
    %176 = arith.divf %174, %175 : vector<16x1xf32>
    %177 = vector.broadcast %169 : vector<16x1xf32> to vector<16x256xf32>
    %178 = arith.subf %165, %177 : vector<16x256xf32>
    %cst_75 = arith.constant 9.99999974E-6 : f32
    %179 = vector.broadcast %cst_75 : f32 to vector<16x1xf32>
    %180 = arith.addf %176, %179 : vector<16x1xf32>
    %181 = math.rsqrt %180 : vector<16x1xf32>
    %182 = vector.broadcast %181 : vector<16x1xf32> to vector<16x256xf32>
    %183 = arith.mulf %178, %182 : vector<16x256xf32>
    %c0_76 = arith.constant 0 : index
    %c0_77 = arith.constant 0 : index
    %184 = vector.load %arg14[%c0_76, %c0_77] : memref<1x256xf32, #tpu.memory_space<vmem>>, vector<1x256xf32>
    %185 = vector.broadcast %184 : vector<1x256xf32> to vector<16x256xf32>
    %186 = arith.mulf %183, %185 : vector<16x256xf32>
    %c0_78 = arith.constant 0 : index
    %c0_79 = arith.constant 0 : index
    %187 = vector.load %arg15[%c0_78, %c0_79] : memref<1x256xf32, #tpu.memory_space<vmem>>, vector<1x256xf32>
    %188 = vector.broadcast %187 : vector<1x256xf32> to vector<16x256xf32>
    %189 = arith.addf %186, %188 : vector<16x256xf32>
    %190 = vector.broadcast %5 : vector<16x1xf32> to vector<16x256xf32>
    %191 = arith.mulf %189, %190 : vector<16x256xf32>
    %c0_80 = arith.constant 0 : index
    %c0_81 = arith.constant 0 : index
    %c0_82 = arith.constant 0 : index
    %192 = vector.load %arg16[%c0_80, %c0_81, %c0_82] : memref<1x16x256xf32, #tpu.memory_space<vmem>>, vector<1x16x256xf32>
    %193 = vector.shape_cast %192 : vector<1x16x256xf32> to vector<16x256xf32>
    %194 = vector.shape_cast %191 : vector<16x256xf32> to vector<1x16x256xf32>
    tpu.vector_store %arg16[%c0_80, %c0_81, %c0_82], %194 {strides = array<i32>} : memref<1x16x256xf32, #tpu.memory_space<vmem>>, vector<1x16x256xf32>,
    return
  }
  func.func @transform_0(%arg0: i32) -> (i32, i32, i32) {
    %c0_i32 = arith.constant 0 : i32
    %c0_i32_0 = arith.constant 0 : i32
    %c0_i32_1 = arith.constant 0 : i32
    return %arg0, %c0_i32, %c0_i32_0 : i32, i32, i32
  }
  func.func @transform_1(%arg0: i32) -> (i32, i32, i32) {
    %c0_i32 = arith.constant 0 : i32
    %c0_i32_0 = arith.constant 0 : i32
    %c0_i32_1 = arith.constant 0 : i32
    return %arg0, %c0_i32, %c0_i32_0 : i32, i32, i32
  }
  func.func @transform_2(%arg0: i32) -> (i32, i32, i32) {
    %c0_i32 = arith.constant 0 : i32
    %c0_i32_0 = arith.constant 0 : i32
    %c0_i32_1 = arith.constant 0 : i32
    return %arg0, %c0_i32, %c0_i32_0 : i32, i32, i32
  }
  func.func @transform_3(%arg0: i32) -> (i32, i32) {
    %c0_i32 = arith.constant 0 : i32
    %c0_i32_0 = arith.constant 0 : i32
    %c0_i32_1 = arith.constant 0 : i32
    return %c0_i32, %c0_i32_0 : i32, i32
  }
  func.func @transform_4(%arg0: i32) -> (i32, i32) {
    %c0_i32 = arith.constant 0 : i32
    %c0_i32_0 = arith.constant 0 : i32
    %c0_i32_1 = arith.constant 0 : i32
    return %c0_i32, %c0_i32_0 : i32, i32
  }
  func.func @transform_5(%arg0: i32) -> (i32, i32) {
    %c0_i32 = arith.constant 0 : i32
    %c0_i32_0 = arith.constant 0 : i32
    %c0_i32_1 = arith.constant 0 : i32
    return %c0_i32, %c0_i32_0 : i32, i32
  }
  func.func @transform_6(%arg0: i32) -> (i32, i32) {
    %c0_i32 = arith.constant 0 : i32
    %c0_i32_0 = arith.constant 0 : i32
    %c0_i32_1 = arith.constant 0 : i32
    return %c0_i32, %c0_i32_0 : i32, i32
  }
  func.func @transform_7(%arg0: i32) -> (i32, i32) {
    %c0_i32 = arith.constant 0 : i32
    %c0_i32_0 = arith.constant 0 : i32
    %c0_i32_1 = arith.constant 0 : i32
    return %c0_i32, %c0_i32_0 : i32, i32
  }
  func.func @transform_8(%arg0: i32) -> (i32, i32) {
    %c0_i32 = arith.constant 0 : i32
    %c0_i32_0 = arith.constant 0 : i32
    %c0_i32_1 = arith.constant 0 : i32
    return %c0_i32, %c0_i32_0 : i32, i32
  }
  func.func @transform_9(%arg0: i32) -> (i32, i32) {
    %c0_i32 = arith.constant 0 : i32
    %c0_i32_0 = arith.constant 0 : i32
    %c0_i32_1 = arith.constant 0 : i32
    return %c0_i32, %c0_i32_0 : i32, i32
  }
  func.func @transform_10(%arg0: i32) -> (i32, i32) {
    %c0_i32 = arith.constant 0 : i32
    %c0_i32_0 = arith.constant 0 : i32
    %c0_i32_1 = arith.constant 0 : i32
    return %c0_i32, %c0_i32_0 : i32, i32
  }
  func.func @transform_11(%arg0: i32) -> (i32, i32) {
    %c0_i32 = arith.constant 0 : i32
    %c0_i32_0 = arith.constant 0 : i32
    %c0_i32_1 = arith.constant 0 : i32
    return %c0_i32, %c0_i32_0 : i32, i32
  }
  func.func @transform_12(%arg0: i32) -> (i32, i32) {
    %c0_i32 = arith.constant 0 : i32
    %c0_i32_0 = arith.constant 0 : i32
    %c0_i32_1 = arith.constant 0 : i32
    return %c0_i32, %c0_i32_0 : i32, i32
  }
  func.func @transform_13(%arg0: i32) -> (i32, i32) {
    %c0_i32 = arith.constant 0 : i32
    %c0_i32_0 = arith.constant 0 : i32
    %c0_i32_1 = arith.constant 0 : i32
    return %c0_i32, %c0_i32_0 : i32, i32
  }
  func.func @transform_14(%arg0: i32) -> (i32, i32) {
    %c0_i32 = arith.constant 0 : i32
    %c0_i32_0 = arith.constant 0 : i32
    %c0_i32_1 = arith.constant 0 : i32
    return %c0_i32, %c0_i32_0 : i32, i32
  }
  func.func @transform_15(%arg0: i32) -> (i32, i32, i32) {
    %c0_i32 = arith.constant 0 : i32
    %c0_i32_0 = arith.constant 0 : i32
    %c0_i32_1 = arith.constant 0 : i32
    return %arg0, %c0_i32, %c0_i32_0 : i32, i32, i32
  }
  func.func @transform_16(%arg0: i32) -> (i32, i32, i32, i32) {
    %c0_i32 = arith.constant 0 : i32
    %c0_i32_0 = arith.constant 0 : i32
    %c0_i32_1 = arith.constant 0 : i32
    %c0_i32_2 = arith.constant 0 : i32
    return %arg0, %c0_i32, %c0_i32_0, %c0_i32_1 : i32, i32, i32, i32
  }
}

</mosaic_0001>

<bundles_post_ra>
// kernel: encoder_layer.1
= control target key start
LH: loop header
LB: loop body
LE: loop exit
PB: predicated region body
PF: predicated region fallthrough
CT: control target
= control target key end

     0   :  { %s5667_s0 = inlined_call_operand.vmem [shape: f32[2,16,256], index: 0, kind: input, shape index: {}]   ;;  %s5668_s1 = inlined_call_operand.hbm [shape: f32[2,16,16], index: 1, kind: input, shape index: {}]   ;;  %s5669_s2 = inlined_call_operand.vmem [shape: f32[2,16,1], index: 2, kind: input, shape index: {}]   ;;  %s5670_s3 = inlined_call_operand.hbm [shape: bf16[256,768], index: 3, kind: input, shape index: {}]   ;;  %s5671_s4 = inlined_call_operand.vmem [shape: f32[1,768], index: 4, kind: input, shape index: {}]   ;;  %s5672_s5 = inlined_call_operand.hbm [shape: bf16[256,256], index: 5, kind: input, shape index: {}]   ;;  %s5673_s6 = inlined_call_operand.vmem [shape: f32[1,256], index: 6, kind: input, shape index: {}]   ;;  %s5674_s7 = inlined_call_operand.vmem [shape: f32[1,256], index: 7, kind: input, shape index: {}]   ;;  %s5675_s8 = inlined_call_operand.hbm [shape: f32[1,256], index: 8, kind: input, shape index: {}]   ;;  %s5676_s9 = inlined_call_operand.hbm [shape: bf16[256,512], index: 9, kind: input, shape index: {}]   ;;  %s5677_s10 = inlined_call_operand.vmem [shape: f32[1,512], index: 10, kind: input, shape index: {}]   ;;  %s5678_s11 = inlined_call_operand.hbm [shape: bf16[512,256], index: 11, kind: input, shape index: {}]   ;;  %s5679_s12 = inlined_call_operand.hbm [shape: f32[1,256], index: 12, kind: input, shape index: {}]   ;;  %s5680_s13 = inlined_call_operand.hbm [shape: f32[1,256], index: 13, kind: input, shape index: {}]   ;;  %s5681_s14 = inlined_call_operand.hbm [shape: f32[1,256], index: 14, kind: input, shape index: {}]   ;;  %s5682_s15 = inlined_call_operand.hbm [shape: f32[2,16,256], index: 15, kind: output, shape index: {0}]   ;;  %s5683_s16 = inlined_call_operand.vmem [shape: f32[2,4,16,16], index: 16, kind: output, shape index: {1}]  }
   0x1   :  { %5688 = sst [smem:[#allocation24_spill]] %s5667_s0 }
   0x2   :  { %5689 = sst [smem:[#allocation25_spill]] %s5669_s2 }
   0x3   :  { %5690 = sst [smem:[#allocation26_spill]] %s5670_s3 }
   0x4   :  { %5691 = sst [smem:[#allocation27_spill]] %s5671_s4 }
   0x5   :  { %5692 = sst [smem:[#allocation28_spill]] %s5673_s6 }
   0x6   :  { %5693 = sst [smem:[#allocation29_spill]] %s5674_s7 }
   0x7   :  { %5694 = sst [smem:[#allocation30_spill]] %s5675_s8 }
   0x8   :  { %5695 = sst [smem:[#allocation31_spill]] %s5677_s10 }
   0x9   :  { %5696 = sst [smem:[#allocation32_spill]] %s5682_s15 }
   0xa   :  { %5697 = sst [smem:[#allocation33_spill]] %s5683_s16 }
   0xb   :  { %22 = vsyncpa [#allocation3], 0 }
   0xc   :  { %24 = vsyncpa [#allocation3 + $0x1], 0 }
   0xd   :  { %25 = vsyncpa [#allocation6], 0 }
   0xe   :  { %26 = vsyncpa [#allocation9], 0 }
   0xf   :  { %27 = vsyncpa [#allocation12], 0 }
  0x10   :  { %28 = vsyncpa [#allocation15], 0 }
  0x11   :  { %29 = vsyncpa [#allocation4], 0 }
  0x12   :  { %31 = vsyncpa [#allocation4 + $0x1], 0  ;;  %s5005_s21 = smov 0   ;;  %s5007_s22 = smov 0  }
  0x13   :  { %s5009_s23 = smov 0   ;;  %s5011_s24 = smov 0  }
  0x14 LB: > { %s4898_s25 = smov [#allocation5]   ;;  %s5026_s27 = sadd.s32 4294967295, %s4896_s24   ;;  %s4896_s24 = sphi %s5011_s24, %s5732_s24   ;;  %s4892_s23 = sphi %s5009_s23, %s5731_s23   ;;  %s4888_s22 = sphi %s5007_s22, %s5730_s22   ;;  %s4884_s21 = sphi %s5005_s21, %s5729_s21  }
  0x15   : > { %s436_s26 = sshll.u32 %s4898_s25, 4  ;;  %p3599_p0 = scmp.ge.s32.totalorder %s4896_s24, 1  ;;  %s5031_s26 = int_to_ptr.vmem [resolvable:$true] %s436_s26 }
  0x16   : > { %p5685_p1 = scmp.eq.s32.totalorder %s5026_s27, 0  ;;  %p424_p2 = scmp.lt.s32.totalorder %s4896_s24, 3 }
  0x17   : > { %s4899_s29 = smov [#allocation8]   ;;  %s4900_s17 = smov [#allocation11]  }
  0x18   : > { %p5033_p3 = pnand %p3599_p0, %p424_p2  ;;  %s472_s30 = sshll.u32 %s4899_s29, 4  ;;  %s5046_s30 = int_to_ptr.vmem [resolvable:$true] %s472_s30 }
  0x19   : > { %s5048_s18 = sshll.u32 %s4900_s17, 4  ;;  %s5700_s3 = sld [smem:[#allocation26_spill]]  ;;  %s499_s18 = int_to_ptr.vmem [resolvable:$true] %s5048_s18 }
  0x1a   : > { %s5698_s28 = scalar_select %p5033_p3, 1, 0 }
  0x1b   : > { %p4017_p5 = pneg %p5033_p3 }
  0x1d   : > { %p5042_p6 = pnand %p4017_p5, %p5685_p1 }
  0x1f   : > { %s4560_s25 = scalar_lea.hbm %s5700_s3, 12288  ;;  %p5058_p8 = pneg %p5042_p6 }
  0x20   : > { %p4561_p7 = scmp.ne.s32.totalorder %s5700_s3, %s4560_s25  ;;  %p4567_p11 = scmp.lt.u32.totalorder %s4560_s25, %s5700_s3 }
  0x22   : > { %p4563_p9 = pnand %p5058_p8, %p4561_p7 }
  0x24   : > { %p4564_p10 = pneg %p4563_p9 }
  0x26   : > { %p4569_p12 = pnand %p4567_p11, %p4564_p10 }
  0x28   : > { %4572 = shalt.err (!%p4569_p12)
}
  0x29   : > { %s4573_s10 = scalar_lea.vmem %s5031_s26, 12288  ;;  %p4581_p5 = scmp.lt.s32.totalorder %s5031_s26, %s5031_s26 }
  0x2a   : > { %p4574_p13 = scmp.ne.s32.totalorder %s5031_s26, %s4573_s10  ;;  %p4582_p4 = scmp.lt.s32.totalorder %s4573_s10, %s4573_s10 }
  0x2c   : > { %p4576_p0 = pnand %p4574_p13, %p5058_p8  ;;  %p4583_p7 = por %p4582_p4, %p4581_p5 }
  0x2e   : > { %p4577_p2 = pneg %p4576_p0 }
  0x30   : > { %p4584_p9 = pnand %p4583_p7, %p4577_p2 }
  0x32   : > { %4587 = shalt.err (!%p4584_p9)
}
  0x33   : > { %s4901_s15 = smov 384   ;;  %s4902_s7 = smov 24  }
  0x34   : > { %4020 = dma.hbm_to_vmem [thread:$0]  (!%p5042_p6), %s5700_s3, 12288, %s5031_s26, [#allocation6], %s4901_s15, %s4901_s15, %s4902_s7  }
  0x35   : > { %s5702_s8 = sld [smem:[#allocation30_spill]] }
  0x3b   : > { %s4588_s2 = scalar_lea.hbm %s5702_s8, 32 }
  0x3c   : > { %p4589_p4 = scmp.ne.s32.totalorder %s5702_s8, %s4588_s2  ;;  %p4595_p12 = scmp.lt.u32.totalorder %s4588_s2, %s5702_s8 }
  0x3e   : > { %p4591_p10 = pnand %p4589_p4, %p5058_p8 }
  0x40   : > { %p4592_p11 = pneg %p4591_p10 }
  0x42   : > { %p4597_p13 = pnand %p4595_p12, %p4592_p11 }
  0x44   : > { %4600 = shalt.err (!%p4597_p13)
}
  0x45   : > { %s4601_s26 = scalar_lea.vmem %s5046_s30, 32  ;;  %p4609_p7 = scmp.lt.s32.totalorder %s5046_s30, %s5046_s30 }
  0x46   : > { %p4602_p0 = scmp.ne.s32.totalorder %s5046_s30, %s4601_s26  ;;  %p4610_p9 = scmp.lt.s32.totalorder %s4601_s26, %s4601_s26 }
  0x48   : > { %p4604_p2 = pnand %p4602_p0, %p5058_p8  ;;  %p4611_p4 = por %p4610_p9, %p4609_p7 }
  0x4a   : > { %p4605_p5 = pneg %p4604_p2 }
  0x4c   : > { %p4612_p10 = pnand %p4611_p4, %p4605_p5 }
  0x4e   : > { %4615 = shalt.err (!%p4612_p10)
}
  0x4f   : > { %4026 = dma.hbm_to_vmem [thread:$0]  (!%p5042_p6), %s5702_s8, 32, %s5046_s30, [#allocation9]  }
  0x50   : > { %s4616_s15 = scalar_lea.hbm %s5678_s11, 8192 }
  0x51   : > { %p4617_p11 = scmp.ne.s32.totalorder %s5678_s11, %s4616_s15  ;;  %p4623_p0 = scmp.lt.u32.totalorder %s4616_s15, %s5678_s11 }
  0x53   : > { %p4619_p12 = pnand %p4617_p11, %p5058_p8 }
  0x55   : > { %p4620_p13 = pneg %p4619_p12 }
  0x57   : > { %p4625_p2 = pnand %p4623_p0, %p4620_p13 }
  0x59   : > { %4628 = shalt.err (!%p4625_p2)
}
  0x5a   : > { %s4629_s17 = scalar_lea.vmem %s499_s18, 8192  ;;  %p4637_p4 = scmp.lt.s32.totalorder %s499_s18, %s499_s18 }
  0x5b   : > { %p4630_p5 = scmp.ne.s32.totalorder %s499_s18, %s4629_s17  ;;  %p4638_p10 = scmp.lt.s32.totalorder %s4629_s17, %s4629_s17 }
  0x5d   : > { %p4632_p7 = pnand %p4630_p5, %p5058_p8  ;;  %p4639_p1 = por %p4638_p10, %p4637_p4 }
  0x5f   : > { %p4633_p9 = pneg %p4632_p7 }
  0x61   : > { %p4640_p3 = pnand %p4639_p1, %p4633_p9 }
  0x63   : > { %4643 = shalt.err (!%p4640_p3)
}
  0x64   : > { %s4903_s30 = smov 128   ;;  %s4904_s10 = smov 8  }
  0x65   : > { %4032 = dma.hbm_to_vmem [thread:$0]  (!%p5042_p6), %s5678_s11, 8192, %s499_s18, [#allocation12], %s4903_s30, %s4903_s30, %s4904_s10  }
  0x66   : > { %s4905_s4 = smov [#allocation14]   ;;  %s4906_s16 = smov [#allocation7]  }
  0x67   : > { %s523_s6 = sshll.u32 %s4905_s4, 4  ;;  %s452_s15 = sshll.u32 %s4906_s16, 4  ;;  %s524_s6 = int_to_ptr.vmem [resolvable:$true] %s523_s6  ;;  %s453_s15 = int_to_ptr.vmem [resolvable:$true] %s452_s15 }
  0x68   : > { %s4644_s20 = scalar_lea.hbm %s5680_s13, 32 }
  0x69   : > { %p4645_p1 = scmp.ne.s32.totalorder %s5680_s13, %s4644_s20  ;;  %p4651_p12 = scmp.lt.u32.totalorder %s4644_s20, %s5680_s13 }
  0x6b   : > { %p4647_p3 = pnand %p4645_p1, %p5058_p8 }
  0x6d   : > { %p4648_p11 = pneg %p4647_p3 }
  0x6f   : > { %p4653_p13 = pnand %p4651_p12, %p4648_p11 }
  0x71   : > { %4656 = shalt.err (!%p4653_p13)
}
  0x72   : > { %s4657_s18 = scalar_lea.vmem %s524_s6, 32  ;;  %p4665_p7 = scmp.lt.s32.totalorder %s524_s6, %s524_s6 }
  0x73   : > { %p4658_p0 = scmp.ne.s32.totalorder %s524_s6, %s4657_s18  ;;  %p4666_p9 = scmp.lt.s32.totalorder %s4657_s18, %s4657_s18 }
  0x75   : > { %p4660_p2 = pnand %p4658_p0, %p5058_p8  ;;  %p4667_p4 = por %p4666_p9, %p4665_p7 }
  0x77   : > { %p4661_p5 = pneg %p4660_p2 }
  0x79   : > { %p4668_p10 = pnand %p4667_p4, %p4661_p5 }
  0x7b   : > { %4671 = shalt.err (!%p4668_p10)
}
  0x7c   : > { %4038 = dma.hbm_to_vmem [thread:$0]  (!%p5042_p6), %s5680_s13, 32, %s524_s6, [#allocation15]  }
  0x7d   : > { %s4672_s4 = scalar_lea.hbm %s5672_s5, 4096 }
  0x7e   : > { %p4673_p1 = scmp.ne.s32.totalorder %s5672_s5, %s4672_s4  ;;  %p4679_p12 = scmp.lt.u32.totalorder %s4672_s4, %s5672_s5 }
  0x80   : > { %p4675_p3 = pnand %p4673_p1, %p5058_p8 }
  0x82   : > { %p4676_p11 = pneg %p4675_p3 }
  0x84   : > { %p4681_p13 = pnand %p4679_p12, %p4676_p11 }
  0x86   : > { %4684 = shalt.err (!%p4681_p13)
}
  0x87   : > { %s4685_s25 = scalar_lea.vmem %s453_s15, 4096  ;;  %p4693_p7 = scmp.lt.s32.totalorder %s453_s15, %s453_s15 }
  0x88   : > { %p4686_p0 = scmp.ne.s32.totalorder %s453_s15, %s4685_s25  ;;  %p4694_p9 = scmp.lt.s32.totalorder %s4685_s25, %s4685_s25 }
  0x8a   : > { %p4688_p2 = pnand %p4686_p0, %p5058_p8  ;;  %p4695_p4 = por %p4694_p9, %p4693_p7 }
  0x8c   : > { %p4689_p5 = pneg %p4688_p2 }
  0x8e   : > { %p4696_p10 = pnand %p4695_p4, %p4689_p5 }
  0x90   : > { %4699 = shalt.err (!%p4696_p10)
}
  0x91   : > { %4023 = dma.hbm_to_vmem [thread:$0]  (!%p5042_p6), %s5672_s5, 4096, %s453_s15, [#allocation6], %s4903_s30, %s4903_s30, %s4904_s10  }
  0x92   : > { %s4907_s18 = smov [#allocation10]   ;;  %s4700_s8 = scalar_lea.hbm %s5676_s9, 8192 }
  0x93   : > { %s482_s26 = sshll.u32 %s4907_s18, 4  ;;  %p4701_p1 = scmp.ne.s32.totalorder %s5676_s9, %s4700_s8  ;;  %s483_s26 = int_to_ptr.vmem [resolvable:$true] %s482_s26 }
  0x94   : > { %p4707_p12 = scmp.lt.u32.totalorder %s4700_s8, %s5676_s9 }
  0x95   : > { %p4703_p3 = pnand %p4701_p1, %p5058_p8 }
  0x97   : > { %p4704_p11 = pneg %p4703_p3 }
  0x99   : > { %p4709_p13 = pnand %p4707_p12, %p4704_p11 }
  0x9b   : > { %4712 = shalt.err (!%p4709_p13)
}
  0x9c   : > { %s4713_s15 = scalar_lea.vmem %s483_s26, 8192  ;;  %p4721_p7 = scmp.lt.s32.totalorder %s483_s26, %s483_s26 }
  0x9d   : > { %p4714_p0 = scmp.ne.s32.totalorder %s483_s26, %s4713_s15  ;;  %p4722_p9 = scmp.lt.s32.totalorder %s4713_s15, %s4713_s15 }
  0x9f   : > { %p4716_p2 = pnand %p4714_p0, %p5058_p8  ;;  %p4723_p4 = por %p4722_p9, %p4721_p7 }
  0xa1   : > { %p4717_p5 = pneg %p4716_p2 }
  0xa3   : > { %p4724_p10 = pnand %p4723_p4, %p4717_p5 }
  0xa5   : > { %4727 = shalt.err (!%p4724_p10)
}
  0xa6   : > { %s4908_s20 = smov 256   ;;  %s4909_s25 = smov 16  }
  0xa7   : > { %4029 = dma.hbm_to_vmem [thread:$0]  (!%p5042_p6), %s5676_s9, 8192, %s483_s26, [#allocation9], %s4908_s20, %s4908_s20, %s4909_s25  }
  0xa8   : > { %s4910_s18 = smov [#allocation13]   ;;  %s4911_s3 = smov [#allocation16]  }
  0xa9   : > { %s512_s2 = sshll.u32 %s4910_s18, 4  ;;  %s534_s8 = sshll.u32 %s4911_s3, 4  ;;  %s513_s2 = int_to_ptr.vmem [resolvable:$true] %s512_s2  ;;  %s5181_s8 = int_to_ptr.vmem [resolvable:$true] %s534_s8 }
  0xaa   : > { %s4728_s7 = scalar_lea.hbm %s5679_s12, 32 }
  0xab   : > { %p4729_p1 = scmp.ne.s32.totalorder %s5679_s12, %s4728_s7  ;;  %p4735_p12 = scmp.lt.u32.totalorder %s4728_s7, %s5679_s12 }
  0xad   : > { %p4731_p3 = pnand %p4729_p1, %p5058_p8 }
  0xaf   : > { %p4732_p11 = pneg %p4731_p3 }
  0xb1   : > { %p4737_p13 = pnand %p4735_p12, %p4732_p11 }
  0xb3   : > { %4740 = shalt.err (!%p4737_p13)
}
  0xb4   : > { %s4741_s20 = scalar_lea.vmem %s513_s2, 32  ;;  %p4749_p7 = scmp.lt.s32.totalorder %s513_s2, %s513_s2 }
  0xb5   : > { %p4742_p0 = scmp.ne.s32.totalorder %s513_s2, %s4741_s20  ;;  %p4750_p9 = scmp.lt.s32.totalorder %s4741_s20, %s4741_s20 }
  0xb7   : > { %p4744_p2 = pnand %p4742_p0, %p5058_p8  ;;  %p4751_p4 = por %p4750_p9, %p4749_p7 }
  0xb9   : > { %p4745_p5 = pneg %p4744_p2 }
  0xbb   : > { %p4752_p10 = pnand %p4751_p4, %p4745_p5 }
  0xbd   : > { %4755 = shalt.err (!%p4752_p10)
}
  0xbe   : > { %4035 = dma.hbm_to_vmem [thread:$0]  (!%p5042_p6), %s5679_s12, 32, %s513_s2, [#allocation12]  }
  0xbf   : > { %s4756_s4 = scalar_lea.hbm %s5681_s14, 32 }
  0xc0   : > { %p4757_p1 = scmp.ne.s32.totalorder %s5681_s14, %s4756_s4  ;;  %p4763_p12 = scmp.lt.u32.totalorder %s4756_s4, %s5681_s14 }
  0xc2   : > { %p4759_p3 = pnand %p4757_p1, %p5058_p8 }
  0xc4   : > { %p4760_p11 = pneg %p4759_p3 }
  0xc6   : > { %p4765_p13 = pnand %p4763_p12, %p4760_p11 }
  0xc8   : > { %4768 = shalt.err (!%p4765_p13)
}
  0xc9   : > { %s4769_s2 = scalar_lea.vmem %s5181_s8, 32  ;;  %p4777_p7 = scmp.lt.s32.totalorder %s5181_s8, %s5181_s8 }
  0xca   : > { %p4770_p0 = scmp.ne.s32.totalorder %s5181_s8, %s4769_s2  ;;  %p4778_p9 = scmp.lt.s32.totalorder %s4769_s2, %s4769_s2 }
  0xcc   : > { %p4772_p2 = pnand %p4770_p0, %p5058_p8  ;;  %p4779_p4 = por %p4778_p9, %p4777_p7 }
  0xce   : > { %p4773_p5 = pneg %p4772_p2 }
  0xd0   : > { %p4780_p10 = pnand %p4779_p4, %p4773_p5 }
  0xd2   : > { %4783 = shalt.err (!%p4780_p10)
}
  0xd3   : > { %4041 = dma.hbm_to_vmem [thread:$0]  (!%p5042_p6), %s5681_s14, 32, %s5181_s8, [#allocation15]  }
  0xd4   : > { %s3598_s0 = sadd.s32 4294967294, %s4896_s24   ;;  %s5226_s29 = sadd.s32 1, %s4896_s24  }
  0xd5   : > { %s67_s20 = ssub.s32 %s4896_s24, %s5226_s29  ;;  %s70_s25 = sadd.s32 1, %s4892_s23 }
  0xd6   : > { %p68_p8 = scmp.eq.s32.totalorder %s67_s20, 0  ;;  %p77_p1 = scmp.ne.s32.totalorder %s4892_s23, %s4888_s22 }
  0xd7   : > { %p78_p3 = scmp.eq.s32.totalorder %s4896_s24, 0  ;;  %p83_p11 = scmp.ne.s32.totalorder %s4888_s22, %s4884_s21 }
  0xd8   : > { %s5237_s17 = scalar_select %p68_p8, %s4892_s23, %s70_s25  }
  0xd9   : > { %p5239_p12 = por %p78_p3, %p77_p1  ;;  %p5704_p13 = scmp.eq.s32.totalorder %s5026_s27, 0 }
  0xda   : > { %p385_p0 = scmp.eq.s32.totalorder %s5026_s27, 1  ;;  %p391_p2 = scmp.eq.s32.totalorder %s3598_s0, 1 }
  0xdb   : > { %p5245_p6 = por %p5704_p13, %p83_p11  ;;  %p4058_p5 = scmp.lt.s32.totalorder %s4896_s24, 2 }
  0xdc   : > { %s553_s3 = sand.u32 1, %s4892_s23   ;;  %p5252_p7 = por %p385_p0, %p77_p1 }
  0xdd   : > { %p5256_p9 = por %p391_p2, %p83_p11  ;;  %s3609_s7 = sshll.u32 %s553_s3, 4 }
  0xde   : > { %s5706_s4 = scalar_select %p5252_p7, 1, 0 }
  0xdf   : > { %s5707_s16 = scalar_select %p5256_p9, 1, 0 }
  0xe0   : > { %s3904_s19 = sshll.u32 %s4896_s24, 8  ;;  %s557_s26 = scalar_lea.vmem [#allocation2], %s3609_s7 }
  0xe1   : > { %s5264_s6 = scalar_lea.hbm %s5668_s1, %s3904_s19  ;;  %s564_s0 = sshll.u32 %s557_s26, 4  ;;  %s5266_s0 = int_to_ptr.vmem [resolvable:$true] %s564_s0 }
  0xe2   : > { %p5270_p4 = pnand %p4058_p5, %p5239_p12  ;;  %s5274_s25 = scalar_lea.sflag [#allocation3], %s553_s3 }
  0xe3   : > { %s4784_s15 = scalar_lea.hbm %s5264_s6, 256  ;;  %s4789_s18 = scalar_lea.hbm %s5668_s1, 512 }
  0xe4   : > { %p4785_p10 = scmp.ne.s32.totalorder %s5264_s6, %s4784_s15  ;;  %p4786_p8 = pneg %p5270_p4 }
  0xe5   : > { %p4790_p11 = scmp.lt.u32.totalorder %s5264_s6, %s5668_s1  ;;  %p4791_p12 = scmp.lt.u32.totalorder %s4789_s18, %s4784_s15 }
  0xe6   : > { %p4787_p1 = pnand %p4786_p8, %p4785_p10  ;;  %p4793_p0 = scmp.lt.u32.totalorder %s4784_s15, %s5264_s6 }
  0xe7   : > { %p4792_p13 = por %p4791_p12, %p4790_p11 }
  0xe8   : > { %p4788_p3 = pneg %p4787_p1 }
  0xe9   : > { %p4794_p2 = por %p4793_p0, %p4792_p13 }
  0xeb   : > { %p4795_p5 = pnand %p4794_p2, %p4788_p3 }
  0xed   : > { %4798 = shalt.err (!%p4795_p5)
}
  0xee   : > { %s4799_s3 = scalar_lea.vmem %s5266_s0, 256  ;;  %s4912_s7 = smov [#allocation2]  }
  0xef   : > { %p4800_p10 = scmp.ne.s32.totalorder %s5266_s0, %s4799_s3  ;;  %s4804_s19 = sshll.u32 %s4912_s7, 4  ;;  %s4805_s19 = int_to_ptr.vmem [resolvable:$false] %s4804_s19 }
  0xf0   : > { %s4806_s2 = scalar_lea.vmem %s4805_s19, 512  ;;  %p4807_p7 = scmp.lt.s32.totalorder %s5266_s0, %s4805_s19 }
  0xf1   : > { %p4802_p1 = pnand %p4800_p10, %p4786_p8  ;;  %p4808_p11 = scmp.lt.s32.totalorder %s4806_s2, %s4799_s3 }
  0xf3   : > { %p4803_p9 = pneg %p4802_p1  ;;  %p4809_p12 = por %p4808_p11, %p4807_p7 }
  0xf5   : > { %p4810_p13 = pnand %p4809_p12, %p4803_p9 }
  0xf7   : > { %4813 = shalt.err (!%p4810_p13)
}
  0xf8   : > { %4045 = dma.hbm_to_vmem [thread:$0]  (!%p5270_p4), %s5264_s6, 256, %s5266_s0, %s5274_s25, %s4903_s30, %s4903_s30, %s4904_s10  }
  0xf9   : > { %p5709_p8 = scmp.ne.s32.totalorder %s5698_s28, 0 }
  0xfa   : > { %s5308_s15 = sand.u32 (!%p5709_p8), 1, %s4888_s22  }
  0xfb   : > { %584 = sbr.rel (%p5709_p8) target bundleno = 3375 (0xd2f), region = 80  ;;  %s3613_s18 = sshll.u32 (!%p5709_p8), %s5308_s15, 4 }
  0xfc   : > { %s587_s26 = scalar_lea.sflag (!%p5709_p8), [#allocation3], %s5308_s15  ;;  %s5312_s3 = scalar_lea.vmem (!%p5709_p8), [#allocation2], %s3613_s18 }
 0x102   : > { %4859 = dma.done.wait (%p5245_p6), %s587_s26, 256  }
 0x103   : > { %4861 = vsyncadd (%p5245_p6), %s587_s26, 4294967040  ;;  %p5710_p7 = scmp.eq.s32.totalorder %s5026_s27, 0 }
 0x105   : > { %4863 = dma.done.wait (%p5710_p7), [#allocation6], 16384   ;;  %p5711_p9 = pmov %p5710_p7 }
 0x106   : > { %p5712_p4 = pmov %p5710_p7 }
 0x107   : > { %4865 = vsyncadd (%p5711_p9), [#allocation6], 4294950912 }
 0x108   : > { %4867 = dma.done.wait (%p5712_p4), [#allocation9], 8224   ;;  %p5713_p3 = pmov %p5712_p4 }
 0x10a   : > { %4869 = vsyncadd (%p5713_p3), [#allocation9], 4294959072  ;;  %p5714_p0 = pmov %p5713_p3 }
 0x10c   : > { %4871 = dma.done.wait (%p5714_p0), [#allocation12], 8224   ;;  %p5715_p2 = pmov %p5714_p0 }
 0x10d   : > { %p5716_p6 = pmov %p5714_p0 }
 0x10e   : > { %4873 = vsyncadd (%p5715_p2), [#allocation12], 4294959072 }
 0x10f   : > { %4875 = dma.done.wait (%p5716_p6), [#allocation15], 64   ;;  %p5717_p5 = pmov %p5714_p0 }
 0x110   : > { %v4132_v0 = vld [vmem:[#allocation5 + $0xc] ss:$24 sps:$4 sm:$0xff]   ;;  %v4134_v1 = vld [vmem:[#allocation5 + $0x8] ss:$24 sps:$4 sm:$0xff]   ;;  %v4135_v2 = vld [vmem:[#allocation5 + $0x3c] ss:$24 sps:$4 sm:$0xff]  }
 0x111   : > { %4877 = vsyncadd (%p5717_p5), [#allocation15], 4294967232  ;;  %1363 = vmatprep.subr.bf16.mxu1 %v4132_v0  ;;  %v4137_v3 = vld [vmem:[#allocation5 + $0x38] ss:$24 sps:$4 sm:$0xff]   ;;  %v4138_v4 = vld [vmem:[#allocation5 + $0x4] ss:$24 sps:$4 sm:$0xff]  }
 0x112   : > { %1364 = vmatpush1.bf16.msra.mxu1 %v4134_v1  ;;  %v4140_v5 = vld [vmem:[#allocation5] ss:$24 sps:$4 sm:$0xff]   ;;  %v4141_v6 = vld [vmem:[#allocation5 + $0x6c] ss:$24 sps:$4 sm:$0xff]   ;;  %1320 = vmatprep.subr.bf16.mxu0 %v4138_v4  ;;  %v4146_v8 = vld [vmem:[#allocation5 + $0x30] ss:$24 sps:$4 sm:$0xff]  }
 0x113   : > { %1365 = vmatprep.subr.bf16.mxu1 %v4135_v2  ;;  %1321 = vmatpush1.bf16.msra.mxu0 %v4140_v5  ;;  %v4144_v7 = vld [vmem:[#allocation5 + $0x34] ss:$24 sps:$4 sm:$0xff]   ;;  %v4143_v9 = vld [vmem:[#allocation5 + $0x68] ss:$24 sps:$4 sm:$0xff]   ;;  %v4150_v11 = vld [vmem:[#allocation5 + $0x64] ss:$24 sps:$4 sm:$0xff]  }
 0x114   : > { %v4147_v10 = vld [vmem:[#allocation5 + $0x9c] ss:$24 sps:$4 sm:$0xff]   ;;  %1322 = vmatprep.subr.bf16.mxu0 %v4144_v7  ;;  %v4152_v12 = vld [vmem:[#allocation5 + $0x60] ss:$24 sps:$4 sm:$0xff]   ;;  %v4153_v15 = vld [vmem:[#allocation5 + $0xcc] ss:$24 sps:$4 sm:$0xff]  }
 0x115   : > { %v4149_v13 = vld [vmem:[#allocation5 + $0x98] ss:$24 sps:$4 sm:$0xff]   ;;  %v4156_v14 = vld [vmem:[#allocation5 + $0x94] ss:$24 sps:$4 sm:$0xff]   ;;  %v4155_v17 = vld [vmem:[#allocation5 + $0xc8] ss:$24 sps:$4 sm:$0xff]  }
 0x116   : > { %1366 = vmatpush1.bf16.msra.mxu1 %v4137_v3  ;;  %v4158_v16 = vld [vmem:[#allocation5 + $0x90] ss:$24 sps:$4 sm:$0xff]   ;;  %v4162_v18 = vld [vmem:[#allocation5 + $0xc4] ss:$24 sps:$4 sm:$0xff]   ;;  %v4164_v20 = vld [vmem:[#allocation5 + $0xc0] ss:$24 sps:$4 sm:$0xff]  }
 0x117   : > { %1367 = vmatprep.subr.bf16.mxu1 %v4141_v6  ;;  %1323 = vmatpush1.bf16.msra.mxu0 %v4146_v8  ;;  %v4159_v19 = vld [vmem:[#allocation5 + $0xfc] ss:$24 sps:$4 sm:$0xff]   ;;  %v4161_v21 = vld [vmem:[#allocation5 + $0xf8] ss:$24 sps:$4 sm:$0xff]   ;;  %v4165_v23 = vld [vmem:[#allocation5 + $0x12c] ss:$24 sps:$4 sm:$0xff]  }
 0x118   : > { %1324 = vmatprep.subr.bf16.mxu0 %v4150_v11  ;;  %v4168_v22 = vld [vmem:[#allocation5 + $0xf4] ss:$24 sps:$4 sm:$0xff]   ;;  %v4170_v24 = vld [vmem:[#allocation5 + $0xf0] ss:$24 sps:$4 sm:$0xff]   ;;  %v4174_v26 = vld [vmem:[#allocation5 + $0x124] ss:$24 sps:$4 sm:$0xff]  }
 0x119   : > { %v4167_v25 = vld [vmem:[#allocation5 + $0x128] ss:$24 sps:$4 sm:$0xff]   ;;  %v4171_v27 = vld [vmem:[#allocation5 + $0x15c] ss:$24 sps:$4 sm:$0xff]   ;;  %v4173_v29 = vld [vmem:[#allocation5 + $0x158] ss:$24 sps:$4 sm:$0xff]  }
 0x11a   : > { %1368 = vmatpush1.bf16.msra.mxu1 %v4143_v9  ;;  %v4176_v28 = vld [vmem:[#allocation5 + $0x120] ss:$24 sps:$4 sm:$0xff]   ;;  %v4180_v30 = vld [vmem:[#allocation5 + $0x154] ss:$24 sps:$4 sm:$0xff]   ;;  %p686_p10 = scmp.lt.s32.totalorder %s5026_s27, 1  ;;  %s5718_s6 = sld [smem:[#allocation24_spill]] }
 0x11b   : > { %1369 = vmatprep.subr.bf16.mxu1 %v4147_v10  ;;  %1325 = vmatpush1.bf16.msra.mxu0 %v4152_v12  ;;  %v4177_v31 = vld [vmem:[#allocation5 + $0x18c] ss:$24 sps:$4 sm:$0xff]   ;;  %v4182_v32 = vld [vmem:[#allocation5 + $0x150] ss:$24 sps:$4 sm:$0xff]   ;;  %v4183_v35 = vld [vmem:[#allocation5 + $0x1bc] ss:$24 sps:$4 sm:$0xff]  }
 0x11c   : > { %1326 = vmatprep.subr.bf16.mxu0 %v4156_v14  ;;  %v4179_v33 = vld [vmem:[#allocation5 + $0x188] ss:$24 sps:$4 sm:$0xff]   ;;  %v4186_v34 = vld [vmem:[#allocation5 + $0x184] ss:$24 sps:$4 sm:$0xff]   ;;  %s5336_s28 = scalar_select %p686_p10, %s5026_s27, 1  ;;  %vm4914_vm0 = vmmov 0  }
 0x11d   : > { %v4188_v36 = vld [vmem:[#allocation5 + $0x180] ss:$24 sps:$4 sm:$0xff]   ;;  %v4192_v38 = vld [vmem:[#allocation5 + $0x1b4] ss:$24 sps:$4 sm:$0xff]   ;;  %v4194_v40 = vld [vmem:[#allocation5 + $0x1b0] ss:$24 sps:$4 sm:$0xff]  }
 0x11e   : > { %1370 = vmatpush1.bf16.msra.mxu1 %v4149_v13  ;;  %v4185_v37 = vld [vmem:[#allocation5 + $0x1b8] ss:$24 sps:$4 sm:$0xff]   ;;  %s3905_s30 = sshll.u32 %s5336_s28, 5  ;;  %v4189_v39 = vld [vmem:[#allocation5 + $0x1ec] ss:$24 sps:$4 sm:$0xff]   ;;  %s5719_s7 = sld [smem:[#allocation27_spill]] }
 0x11f   : > { %1371 = vmatprep.subr.bf16.mxu1 %v4153_v15  ;;  %1327 = vmatpush1.bf16.msra.mxu0 %v4158_v16  ;;  %v4191_v41 = vld [vmem:[#allocation5 + $0x1e8] ss:$24 sps:$4 sm:$0xff]   ;;  %v4198_v42 = vld [vmem:[#allocation5 + $0x1e4] ss:$24 sps:$4 sm:$0xff]   ;;  %v4197_v48 = vld [vmem:[#allocation5 + $0x218] ss:$24 sps:$4 sm:$0xff]  }
 0x120   : > { %1328 = vmatprep.subr.bf16.mxu0 %v4162_v18  ;;  %s5342_s0 = scalar_lea.vmem %s5718_s6, %s3905_s30  ;;  %v4195_v43 = vld [vmem:[#allocation5 + $0x21c] ss:$24 sps:$4 sm:$0xff]   ;;  %v4200_v46 = vld [vmem:[#allocation5 + $0x1e0] ss:$24 sps:$4 sm:$0xff]   ;;  %v4201_v50 = vld [vmem:[#allocation5 + $0x24c] ss:$24 sps:$4 sm:$0xff]  }
 0x121   : > { %v703_v44 = vld [vmem:[%s5342_s0 + $0x8] sm:$0xff]  ;;  %v705_v45 = vld [vmem:[%s5342_s0 + $0x18] sm:$0xff]  ;;  %v702_v1 = vld [vmem:[%s5342_s0] sm:$0xff]  ;;  %vm1454_vm1 = vcmask 523264   ;;  %vm1506_vm2 = vcmask 130048   ;;  %s4915_s19 = smov 64  }
 0x122   : > { %1372 = vmatpush1.bf16.msra.mxu1 %v4155_v17  ;;  %v711_v47 = vpack.c.bf16 %v705_v45, %v703_v44  ;;  %v4204_v49 = vld [vmem:[#allocation5 + $0x214] ss:$24 sps:$4 sm:$0xff]   ;;  %v4206_v51 = vld [vmem:[#allocation5 + $0x210] ss:$24 sps:$4 sm:$0xff]   ;;  %v4210_v53 = vld [vmem:[#allocation5 + $0x244] ss:$24 sps:$4 sm:$0xff]  }
 0x123   : > { %1373 = vmatprep.subr.bf16.mxu1 %v4159_v19  ;;  %1329 = vmatpush1.bf16.msra.mxu0 %v4164_v20  ;;  %v4203_v52 = vld [vmem:[#allocation5 + $0x248] ss:$24 sps:$4 sm:$0xff]   ;;  %v4207_v54 = vld [vmem:[#allocation5 + $0x27c] ss:$24 sps:$4 sm:$0xff]   ;;  %v4209_v56 = vld [vmem:[#allocation5 + $0x278] ss:$24 sps:$4 sm:$0xff]  }
 0x124   : > { %1330 = vmatprep.subr.bf16.mxu0 %v4168_v22  ;;  %1395 = vmatprep.mubr.bf16.mxu1 %v711_v47  ;;  %v4212_v55 = vld [vmem:[#allocation5 + $0x240] ss:$24 sps:$4 sm:$0xff]   ;;  %v4216_v57 = vld [vmem:[#allocation5 + $0x274] ss:$24 sps:$4 sm:$0xff]   ;;  %v4218_v59 = vld [vmem:[#allocation5 + $0x270] ss:$24 sps:$4 sm:$0xff]  }
 0x125   : > { %1352 = vmatprep.mubr.bf16.mxu0 %v711_v47  ;;  %v4213_v58 = vld [vmem:[#allocation5 + $0x2ac] ss:$24 sps:$4 sm:$0xff]   ;;  %v4215_v60 = vld [vmem:[#allocation5 + $0x2a8] ss:$24 sps:$4 sm:$0xff]   ;;  %v4219_v62 = vld [vmem:[#allocation5 + $0x2dc] ss:$24 sps:$4 sm:$0xff]  }
 0x126   : > { %1374 = vmatpush1.bf16.msra.mxu1 %v4161_v21  ;;  %v4222_v61 = vld [vmem:[#allocation5 + $0x2a4] ss:$24 sps:$4 sm:$0xff]   ;;  %v4221_v63 = vld [vmem:[#allocation5 + $0x2d8] ss:$24 sps:$4 sm:$0xff]   ;;  %v4225_v3 = vld [vmem:[#allocation5 + $0x2d4] ss:$24 sps:$4 sm:$0xff]  }
 0x127   : > { %1375 = vmatprep.subr.bf16.mxu1 %v4165_v23  ;;  %1331 = vmatpush1.bf16.msra.mxu0 %v4170_v24  ;;  %v4224_v0 = vld [vmem:[#allocation5 + $0x2a0] ss:$24 sps:$4 sm:$0xff]   ;;  %v704_v2 = vld [vmem:[%s5342_s0 + $0x10] sm:$0xff]  ;;  %v4233_v8 = vld [vmem:[#allocation5 + $0x44] ss:$24 sps:$4 sm:$0xff]   ;;  %s3907_s2 = sshll.u32 %s5336_s28, 6 }
 0x128   : > { %1332 = vmatprep.subr.bf16.mxu0 %v4174_v26  ;;  %v5348_v4 = vpack.c.bf16 %v704_v2, %v702_v1  ;;  %v4227_v5 = vld [vmem:[#allocation5 + $0x2d0] ss:$24 sps:$4 sm:$0xff]   ;;  %v4230_v6 = vld [vmem:[#allocation5 + $0x14] ss:$24 sps:$4 sm:$0xff]   ;;  %v4231_v9 = vld [vmem:[#allocation5 + $0x40] ss:$24 sps:$4 sm:$0xff]  }
 0x129   : > { %v4228_v7 = vld [vmem:[#allocation5 + $0x10] ss:$24 sps:$4 sm:$0xff]   ;;  %v4236_v10 = vld [vmem:[#allocation5 + $0x74] ss:$24 sps:$4 sm:$0xff]   ;;  %v4239_v12 = vld [vmem:[#allocation5 + $0xa4] ss:$24 sps:$4 sm:$0xff]  }
 0x12a   : > { %1376 = vmatpush1.bf16.msra.mxu1 %v4167_v25  ;;  %v4234_v11 = vld [vmem:[#allocation5 + $0x70] ss:$24 sps:$4 sm:$0xff]   ;;  %v4237_v13 = vld [vmem:[#allocation5 + $0xa0] ss:$24 sps:$4 sm:$0xff]   ;;  %v4242_v14 = vld [vmem:[#allocation5 + $0xd4] ss:$24 sps:$4 sm:$0xff]  }
 0x12b   : > { %1377 = vmatprep.subr.bf16.mxu1 %v4171_v27  ;;  %1333 = vmatpush1.bf16.msra.mxu0 %v4176_v28  ;;  %v4240_v15 = vld [vmem:[#allocation5 + $0xd0] ss:$24 sps:$4 sm:$0xff]   ;;  %v4245_v16 = vld [vmem:[#allocation5 + $0x104] ss:$24 sps:$4 sm:$0xff]   ;;  %v4243_v17 = vld [vmem:[#allocation5 + $0x100] ss:$24 sps:$4 sm:$0xff]  }
 0x12c   : > { %1334 = vmatprep.subr.bf16.mxu0 %v4180_v30  ;;  %v4248_v18 = vld [vmem:[#allocation5 + $0x134] ss:$24 sps:$4 sm:$0xff]   ;;  %v4246_v19 = vld [vmem:[#allocation5 + $0x130] ss:$24 sps:$4 sm:$0xff]   ;;  %v4251_v20 = vld [vmem:[#allocation5 + $0x164] ss:$24 sps:$4 sm:$0xff]  }
 0x12d   : > { %v4249_v21 = vld [vmem:[#allocation5 + $0x160] ss:$24 sps:$4 sm:$0xff]   ;;  %v4254_v22 = vld [vmem:[#allocation5 + $0x194] ss:$24 sps:$4 sm:$0xff]   ;;  %v4252_v23 = vld [vmem:[#allocation5 + $0x190] ss:$24 sps:$4 sm:$0xff]  }
 0x12e   : > { %1378 = vmatpush1.bf16.msra.mxu1 %v4173_v29  ;;  %v4257_v24 = vld [vmem:[#allocation5 + $0x1c4] ss:$24 sps:$4 sm:$0xff]   ;;  %v4255_v25 = vld [vmem:[#allocation5 + $0x1c0] ss:$24 sps:$4 sm:$0xff]   ;;  %v4260_v26 = vld [vmem:[#allocation5 + $0x1f4] ss:$24 sps:$4 sm:$0xff]  }
 0x12f   : > { %1379 = vmatprep.subr.bf16.mxu1 %v4177_v31  ;;  %1335 = vmatpush1.bf16.msra.mxu0 %v4182_v32  ;;  %v4258_v27 = vld [vmem:[#allocation5 + $0x1f0] ss:$24 sps:$4 sm:$0xff]   ;;  %v4263_v28 = vld [vmem:[#allocation5 + $0x224] ss:$24 sps:$4 sm:$0xff]   ;;  %v4261_v29 = vld [vmem:[#allocation5 + $0x220] ss:$24 sps:$4 sm:$0xff]  }
 0x130   : > { %1336 = vmatprep.subr.bf16.mxu0 %v4186_v34  ;;  %v4266_v30 = vld [vmem:[#allocation5 + $0x254] ss:$24 sps:$4 sm:$0xff]   ;;  %v4264_v31 = vld [vmem:[#allocation5 + $0x250] ss:$24 sps:$4 sm:$0xff]   ;;  %v4269_v32 = vld [vmem:[#allocation5 + $0x284] ss:$24 sps:$4 sm:$0xff]  }
 0x131   : > { %v4272_v34 = vld [vmem:[#allocation5 + $0x2b4] ss:$24 sps:$4 sm:$0xff]   ;;  %s5721_s6 = sld [smem:[#allocation28_spill]]  ;;  %s3906_s20 = sshll.u32 %s5336_s28, 4 }
 0x132   : > { %1380 = vmatpush1.bf16.msra.mxu1 %v4179_v33  ;;  %v4267_v33 = vld [vmem:[#allocation5 + $0x280] ss:$24 sps:$4 sm:$0xff]   ;;  %s5723_s18 = sld [smem:[#allocation29_spill]]  ;;  %s3622_s10 = sshll.u32 %s5308_s15, 5 }
 0x133   : > { %1381 = vmatprep.subr.bf16.mxu1 %v4183_v35  ;;  %1337 = vmatpush1.bf16.msra.mxu0 %v4188_v36  ;;  %v4270_v35 = vld [vmem:[#allocation5 + $0x2b0] ss:$24 sps:$4 sm:$0xff]   ;;  %v4275_v36 = vld [vmem:[#allocation5 + $0x2e4] ss:$24 sps:$4 sm:$0xff]   ;;  %s3908_s8 = sshll.u32 %s5026_s27, 9  ;;  %s3379_s27 = scalar_lea.sflag [#allocation4], %s5308_s15 }
 0x134   : > { %1338 = vmatprep.subr.bf16.mxu0 %v4192_v38  ;;  %v4913_v38 = vmov 0.0   ;;  %p5726_p11 = scmp.ne.s32.totalorder %s5706_s4, 0 }
 0x136   : > { %1382 = vmatpush1.bf16.msra.mxu1 %v4185_v37  ;;  %v4273_v37 = vld [vmem:[#allocation5 + $0x2e0] ss:$24 sps:$4 sm:$0xff]  }
 0x137   : > { %1383 = vmatprep.subr.bf16.mxu1 %v4189_v39  ;;  %1339 = vmatpush1.bf16.msra.mxu0 %v4194_v40  ;;  %v810_v39 = vlaneseq }
 0x138   : > { %1340 = vmatprep.subr.bf16.mxu0 %v4198_v42  ;;  %v808_v42 = vld [vmem:[%s5719_s7] sm:$0x3f] }
 0x139   : > { %v5359_v40 = vshrl.u32 %v810_v39, 7 }
 0x13a   : > { %1384 = vmatpush1.bf16.msra.mxu1 %v4191_v41 }
 0x13b   : > { %1385 = vmatprep.subr.bf16.mxu1 %v4195_v43  ;;  %1341 = vmatpush1.bf16.msra.mxu0 %v4200_v46  ;;  %v820_v41 = vsub.s32 2, %v5359_v40  ;;  %v824_v43 = vsub.s32 3, %v5359_v40  ;;  %v5367_v44 = vsub.s32 0, %v5359_v40  ;;  %v5370_v45 = vsub.s32 1, %v5359_v40 }
 0x13c   : > { %1342 = vmatprep.subr.bf16.mxu0 %v4204_v49 }
 0x13d   : > { %v821_v46 = vrot.slane %v808_v42, %v820_v41  ;;  %v813_v49 = vrot.slane %v808_v42, %v5367_v44 }
 0x13e   : > { %1386 = vmatpush1.bf16.msra.mxu1 %v4197_v48  ;;  %v825_v48 = vrot.slane %v808_v42, %v824_v43 }
 0x13f   : > { %1387 = vmatprep.subr.bf16.mxu1 %v4201_v50  ;;  %1343 = vmatpush1.bf16.msra.mxu0 %v4206_v51  ;;  %v817_v51 = vrot.slane %v808_v42, %v5370_v45 }
 0x140   : > { %1344 = vmatprep.subr.bf16.mxu0 %v4210_v53 }
 0x142   : > { %1388 = vmatpush1.bf16.msra.mxu1 %v4203_v52 }
 0x143   : > { %1389 = vmatprep.subr.bf16.mxu1 %v4207_v54  ;;  %1345 = vmatpush1.bf16.msra.mxu0 %v4212_v55 }
 0x144   : > { %1346 = vmatprep.subr.bf16.mxu0 %v4216_v57 }
 0x146   : > { %1390 = vmatpush1.bf16.msra.mxu1 %v4209_v56 }
 0x147   : > { %1391 = vmatprep.subr.bf16.mxu1 %v4213_v58  ;;  %1347 = vmatpush1.bf16.msra.mxu0 %v4218_v59 }
 0x148   : > { %1348 = vmatprep.subr.bf16.mxu0 %v4222_v61 }
 0x14a   : > { %1392 = vmatpush1.bf16.msra.mxu1 %v4215_v60 }
 0x14b   : > { %1393 = vmatprep.subr.bf16.mxu1 %v4219_v62  ;;  %1349 = vmatpush1.bf16.msra.mxu0 %v4224_v0 }
 0x14c   : > { %1350 = vmatprep.subr.bf16.mxu0 %v4225_v3 }
 0x14e   : > { %1394 = vmatpush1.bf16.msra.mxu1 %v4221_v63 }
 0x14f   : > { %1351 = vmatpush1.bf16.msra.mxu0 %v4227_v5  ;;  %3949 = vmatprep.subr.bf16.mxu1 %v4913_v38 }
 0x150   : > { %1406 = vmatprep.subr.bf16.mxu0 %v4230_v6 }
 0x151   : > { %1396 = vmatmul.mubr.bf16.vlgmr.msra.gmra.mrb[0].mxu1 %v5348_v4 }
 0x152   : > { %1353 = vmatmul.mubr.bf16.vlgmr.msra.gmra.mrb[0].mxu0 %v5348_v4  ;;  %3951 = vmatprep.mubr.msk.bf16.mxu1 %vm4914_vm0, %v4913_v38 }
 0x153   : > { %1407 = vmatpush1.bf16.msra.mxu0 %v4228_v7  ;;  %1438 = vmatprep.mubr.bf16.mxu0 %v711_v47 }
 0x154   : > { %1408 = vmatprep.subr.bf16.mxu0 %v4233_v8  ;;  %v828_v8 = vsub.s32 4, %v5359_v40 }
 0x157   : > { %1409 = vmatpush1.bf16.msra.mxu0 %v4231_v9  ;;  %v832_v9 = vsub.s32 5, %v5359_v40 }
 0x158   : > { %1410 = vmatprep.subr.bf16.mxu0 %v4236_v10  ;;  %v829_v10 = vrot.slane %v808_v42, %v828_v8 }
 0x15b   : > { %1411 = vmatpush1.bf16.msra.mxu0 %v4234_v11  ;;  %v833_v11 = vrot.slane %v808_v42, %v832_v9 }
 0x15c   : > { %1412 = vmatprep.subr.bf16.mxu0 %v4239_v12 }
 0x15f   : > { %1413 = vmatpush1.bf16.msra.mxu0 %v4237_v13 }
 0x160   : > { %1414 = vmatprep.subr.bf16.mxu0 %v4242_v14 }
 0x163   : > { %1415 = vmatpush1.bf16.msra.mxu0 %v4240_v15 }
 0x164   : > { %1416 = vmatprep.subr.bf16.mxu0 %v4245_v16 }
 0x167   : > { %1417 = vmatpush1.bf16.msra.mxu0 %v4243_v17 }
 0x168   : > { %1418 = vmatprep.subr.bf16.mxu0 %v4248_v18 }
 0x16b   : > { %1419 = vmatpush1.bf16.msra.mxu0 %v4246_v19 }
 0x16c   : > { %1420 = vmatprep.subr.bf16.mxu0 %v4251_v20 }
 0x16f   : > { %1421 = vmatpush1.bf16.msra.mxu0 %v4249_v21 }
 0x170   : > { %1422 = vmatprep.subr.bf16.mxu0 %v4254_v22  ;;  %v706_v22 = vld [vmem:[%s5312_s3] sm:$0xff] }
 0x173   : > { %1423 = vmatpush1.bf16.msra.mxu0 %v4252_v23  ;;  %v707_v23 = vld [vmem:[%s5312_s3 + $0x8] sm:$0xff]  ;;  %s5720_s3 = sld [smem:[#allocation33_spill]] }
 0x174   : > { %1424 = vmatprep.subr.bf16.mxu0 %v4257_v24  ;;  %v5412_v24 = vmul.f32 1e+30, %v706_v22 }
 0x177   : > { %1425 = vmatpush1.bf16.msra.mxu0 %v4255_v25 }
 0x178   : > { %1426 = vmatprep.subr.bf16.mxu0 %v4260_v26 }
 0x179   : > { %s5440_s30 = scalar_lea.vmem %s5720_s3, %s3907_s2 }
 0x17b   : > { %1427 = vmatpush1.bf16.msra.mxu0 %v4258_v27 }
 0x17c   : > { %1428 = vmatprep.subr.bf16.mxu0 %v4263_v28 }
 0x17f   : > { %1429 = vmatpush1.bf16.msra.mxu0 %v4261_v29  ;;  %v5414_v29 = vmul.f32 1e+30, %v707_v23 }
 0x180   : > { %1430 = vmatprep.subr.bf16.mxu0 %v4266_v30 }
 0x183   : > { %1431 = vmatpush1.bf16.msra.mxu0 %v4264_v31 }
 0x184   : > { %1432 = vmatprep.subr.bf16.mxu0 %v4269_v32 }
 0x187   : > { %1433 = vmatpush1.bf16.msra.mxu0 %v4267_v33 }
 0x188   : > { %1434 = vmatprep.subr.bf16.mxu0 %v4272_v34 }
 0x18b   : > { %1435 = vmatpush1.bf16.msra.mxu0 %v4270_v35 }
 0x18c   : > { %1436 = vmatprep.subr.bf16.mxu0 %v4275_v36 }
 0x18f   : > { %1437 = vmatpush1.bf16.msra.mxu0 %v4273_v37 }
 0x190   : > { %3925 = vmatprep.subr.bf16.mxu0 %v4913_v38 }
 0x192   : > { %1439 = vmatmul.mubr.bf16.vlgmr.msra.gmra.mrb[4].mxu0 %v5348_v4 }
 0x193   : > { %3927 = vmatprep.mubr.msk.bf16.mxu0 %vm4914_vm0, %v4913_v38 }
 0x224   : > { %v1397_v47 = vpop.f32.mrb[0].mxu1 }
 0x225   : > { %v1399_v50 = vpop.f32.mrb[1].mxu1  ;;  %v1398_v53 = vadd.f32 %v1397_v47, %v821_v46  ;;  %v1354_v56 = vpop.f32.mrb[0].mxu0 }
 0x226   : > { %v1401_v52 = vpop.f32.mrb[2].mxu1  ;;  %v1400_v57 = vadd.f32 %v1399_v50, %v825_v48  ;;  %v1355_v59 = vadd.f32 %v1354_v56, %v813_v49  ;;  %v1356_v60 = vpop.f32.mrb[1].mxu0 }
 0x227   : > { %v1402_v54 = vadd.f32 %v1401_v52, %v821_v46  ;;  %v1403_v55 = vpop.f32.mrb[3].mxu1  ;;  %v1357_v62 = vadd.f32 %v1356_v60, %v817_v51  ;;  %v1358_v63 = vpop.f32.mrb[2].mxu0 }
 0x228   : > { %v1404_v58 = vadd.f32 %v1403_v55, %v825_v48  ;;  %v1359_v1 = vadd.f32 %v1358_v63, %v813_v49  ;;  %v1360_v2 = vpop.f32.mrb[3].mxu0 }
 0x229   : > { %v5378_v61 = vpack.c.bf16 %v1402_v54, %v1398_v53  ;;  %v1361_v4 = vadd.f32 %v1360_v2, %v817_v51 }
 0x22a   : > { %v5380_v0 = vpack.c.bf16 %v1404_v58, %v1400_v57  ;;  %v5384_v5 = vpack.c.bf16 %v1359_v1, %v1355_v59 }
 0x22b   : > { %v1459_v3 = vsel %vm1454_vm1, %v5378_v61, 0  ;;  %v5388_v7 = vpack.c.bf16 %v1361_v4, %v1357_v62 }
 0x22c   : > { %3926 = vmatpush3.bf16.xpose.msra.mxu0 %v1459_v3  ;;  %v1714_v6 = vsel %vm1454_vm1, %v5380_v0, 0 }
 0x22d   : > { %3950 = vmatpush3.bf16.xpose.msra.mxu1 %v1714_v6  ;;  %3931 = vmatprep.subr.bf16.mxu0 %v4913_v38 }
 0x22e   : > { %3955 = vmatprep.subr.bf16.mxu1 %v4913_v38 }
 0x233   : > { %3928 = vmatmul.mubr.msk.bf16.vlgmr.msra.gmra.mrb[8].mxu0 %vm1454_vm1, %v5384_v5 }
 0x234   : > { %3952 = vmatmul.mubr.msk.bf16.vlgmr.msra.gmra.mrb[4].mxu1 %vm1454_vm1, %v5388_v7  ;;  %3933 = vmatprep.mubr.msk.bf16.mxu0 %vm4914_vm0, %v4913_v38 }
 0x235   : > { %3957 = vmatprep.mubr.msk.bf16.mxu1 %vm4914_vm0, %v4913_v38 }
 0x265   : > { %v1440_v12 = vpop.f32.mrb[4].mxu0 }
 0x266   : > { %v1441_v13 = vadd.f32 %v1440_v12, %v829_v10  ;;  %v1442_v14 = vpop.f32.mrb[5].mxu0 }
 0x267   : > { %v1443_v15 = vadd.f32 %v1442_v14, %v833_v11  ;;  %v1444_v16 = vpop.f32.mrb[6].mxu0 }
 0x268   : > { %v1445_v17 = vadd.f32 %v1444_v16, %v829_v10  ;;  %v1446_v18 = vpop.f32.mrb[7].mxu0 }
 0x269   : > { %v1447_v19 = vadd.f32 %v1446_v18, %v833_v11 }
 0x26a   : > { %v5402_v20 = vpack.c.bf16 %v1445_v17, %v1441_v13 }
 0x26b   : > { %v5404_v21 = vpack.c.bf16 %v1447_v19, %v1443_v15 }
 0x26c   : > { %3932 = vmatpush3.bf16.msra.mxu0 %v5402_v20 }
 0x26d   : > { %3956 = vmatpush3.bf16.msra.mxu1 %v5404_v21  ;;  %3937 = vmatprep.subr.bf16.mxu0 %v4913_v38 }
 0x26e   : > { %3961 = vmatprep.subr.bf16.mxu1 %v4913_v38 }
 0x306   : > { %v1495_v25 = vpop.f32.mrb[8].mxu0 }
 0x307   : > { %v1502_v26 = vmul.f32 0.125, %v1495_v25  ;;  %v3929_v27 = vpop.f32.mrb[9].mxu0  ;;  %v1750_v28 = vpop.f32.mrb[4].mxu1 }
 0x308   : > { %v1757_v30 = vmul.f32 0.125, %v1750_v28  ;;  %v1498_v31 = vpop.f32.mrb[10].mxu0  ;;  %v3953_v32 = vpop.f32.mrb[5].mxu1 }
 0x309   : > { %v1503_v33 = vmul.f32 0.125, %v1498_v31  ;;  %v3930_v34 = vpop.f32.mrb[11].mxu0  ;;  %v1753_v35 = vpop.f32.mrb[6].mxu1  ;;  %v1504_v36 = vsub.f32 %v1502_v26, %v5412_v24 }
 0x30a   : > { %v1758_v37 = vmul.f32 0.125, %v1753_v35  ;;  %v3954_v39 = vpop.f32.mrb[7].mxu1  ;;  %v1759_v42 = vsub.f32 %v1757_v30, %v5412_v24 }
 0x30b   : > { %v1507_v46 = vsel %vm1506_vm2, %v1504_v36, -inf  ;;  %v1505_v47 = vsub.f32 %v1503_v33, %v5414_v29 }
 0x30c   : > { %1508 = vmax.xlane.f32.xlu1 %v1507_v46  ;;  %v1761_v48 = vsel %vm1506_vm2, %v1759_v42, -inf  ;;  %v1760_v49 = vsub.f32 %v1758_v37, %v5414_v29 }
 0x30d   : > { %1762 = vmax.xlane.f32.xlu0 %v1761_v48  ;;  %v1510_v50 = vsel %vm1506_vm2, %v1505_v47, -inf }
 0x30e   : > { %v1764_v51 = vsel %vm1506_vm2, %v1760_v49, -inf }
 0x310   : > { %1511 = vmax.xlane.f32.xlu1 %v1510_v50 }
 0x311   : > { %1765 = vmax.xlane.f32.xlu0 %v1764_v51 }
 0x321   : > { %1580 = vrot.lane.b32.xlu1 %v5378_v61, %s4915_s19 }
 0x399   : > { %v1509_v52 = vpop.xlane.xlu1 %1508 }
 0x39a   : > { %v1513_v53 = vsub.f32 %v1504_v36, %v1509_v52  ;;  %v1763_v54 = vpop.xlane.xlu0 %1762 }
 0x39b   : > { %v1767_v55 = vsub.f32 %v1759_v42, %v1763_v54 }
 0x39c   : > { %v1515_v56 = vmul.f32 1.442695, %v1513_v53 }
 0x39d   : > { %v1769_v57 = vmul.f32 1.442695, %v1767_v55  ;;  %v1512_v58 = vpop.xlane.xlu1 %1511 }
 0x39e   : > { %4516 = vpow2.f32 %v1515_v56  ;;  %v1514_v59 = vsub.f32 %v1505_v47, %v1512_v58  ;;  %v1766_v60 = vpop.xlane.xlu0 %1765 }
 0x39f   : > { %v1768_v62 = vsub.f32 %v1760_v49, %v1766_v60  ;;  %4518 = vpow2.f32 %v1769_v57 }
 0x3a0   : > { %v1517_v63 = vmul.f32 1.442695, %v1514_v59 }
 0x3a1   : > { %v1771_v1 = vmul.f32 1.442695, %v1768_v62  ;;  %v1581_v11 = vpop.permute.xlu1 %1580 }
 0x3a2   : > { %4520 = vpow2.f32 %v1517_v63  ;;  %v1586_v25 = vsel %vm1454_vm1, %v1581_v11, 0 }
 0x3a3   : > { %4522 = vpow2.f32 %v1771_v1 }
 0x3a8   : > { %v4517_v2 = vpop.eup %4516 }
 0x3a9   : > { %v1519_v3 = vsel %vm1506_vm2, %v4517_v2, 0.0  ;;  %v4519_v61 = vpop.eup %4518 }
 0x3aa   : > { %1520 = vadd.xlane.f32.xlu0 %v1519_v3  ;;  %v1773_v6 = vsel %vm1506_vm2, %v4519_v61, 0.0 }
 0x3ac   : > { %v4521_v4 = vpop.eup %4520 }
 0x3ad   : > { %v1522_v8 = vsel %vm1506_vm2, %v4521_v4, 0.0  ;;  %v4523_v9 = vpop.eup %4522 }
 0x3ae   : > { %1774 = vadd.xlane.f32.xlu0 %v1773_v6  ;;  %1523 = vadd.xlane.f32.xlu1 %v1522_v8  ;;  %v1776_v10 = vsel %vm1506_vm2, %v4523_v9, 0.0 }
 0x3b2   : > { %1777 = vadd.xlane.f32.xlu1 %v1776_v10 }
 0x3c3   : > { %1832 = vrot.lane.b32.xlu1 %v5388_v7, %s4915_s19 }
 0x3c4   : > { %1835 = vrot.lane.b32.xlu0 %v5380_v0, %s4915_s19 }
 0x3c7   : > { %1577 = vrot.lane.b32.xlu1 %v5384_v5, %s4915_s19 }
 0x437   : > { %v1521_v12 = vpop.xlane.xlu0 %1520 }
 0x438   : > { %4524 = vrcp.f32 %v1521_v12 }
 0x43b   : > { %v1775_v13 = vpop.xlane.xlu0 %1774  ;;  %v1524_v14 = vpop.xlane.xlu1 %1523 }
 0x43c   : > { %4526 = vrcp.f32 %v1775_v13 }
 0x43d   : > { %4528 = vrcp.f32 %v1524_v14 }
 0x43f   : > { %v1778_v15 = vpop.xlane.xlu1 %1777  ;;  %v1836_v26 = vpop.permute.xlu0 %1835 }
 0x440   : > { %4530 = vrcp.f32 %v1778_v15  ;;  %v1841_v30 = vsel %vm1454_vm1, %v1836_v26, 0 }
 0x442   : > { %v4525_v16 = vpop.eup %4524 }
 0x443   : > { %v1527_v0 = vmul.f32 %v4525_v16, %v4517_v2  ;;  %v1833_v27 = vpop.permute.xlu1 %1832 }
 0x445   : > { %1529 = vst.msk [vmem:[%s5440_s30] sm:$0xff] %vm1506_vm2, %v1527_v0 }
 0x446   : > { %v4527_v5 = vpop.eup %4526 }
 0x447   : > { %v4529_v7 = vpop.eup %4528  ;;  %v1781_v17 = vmul.f32 %v4527_v5, %v4519_v61  ;;  %v1578_v31 = vpop.permute.xlu1 %1577 }
 0x448   : > { %v1528_v18 = vmul.f32 %v4529_v7, %v4521_v4 }
 0x449   : > { %3732 = vst.msk [vmem:[%s5440_s30 + $0x20] sm:$0xff] %vm1506_vm2, %v1781_v17 }
 0x44a   : > { %v4531_v19 = vpop.eup %4530  ;;  %1530 = vst.msk [vmem:[%s5440_s30 + $0x8] sm:$0xff] %vm1506_vm2, %v1528_v18  ;;  %v1531_v22 = vpack.c.bf16 %v1528_v18, %v1527_v0 }
 0x44b   : > { %v1782_v23 = vmul.f32 %v4531_v19, %v4523_v9 }
 0x44c   : > { %3934 = vmatmul.mubr.msk.bf16.vlgmr.msra.gmra.mrb[12].mxu0 %vm1506_vm2, %v1531_v22 }
 0x44d   : > { %3733 = vst.msk [vmem:[%s5440_s30 + $0x28] sm:$0xff] %vm1506_vm2, %v1782_v23  ;;  %3938 = vmatpush3.bf16.xpose.msra.mxu0 %v1586_v25  ;;  %v1786_v28 = vpack.c.bf16 %v1782_v23, %v1781_v17  ;;  %3939 = vmatprep.mubr.msk.bf16.mxu0 %vm4914_vm0, %v4913_v38 }
 0x44e   : > { %3943 = vmatprep.subr.bf16.mxu0 %v4913_v38 }
 0x44f   : > { %3958 = vmatmul.mubr.msk.bf16.vlgmr.msra.gmra.mrb[8].mxu1 %vm1506_vm2, %v1786_v28 }
 0x450   : > { %3962 = vmatpush3.bf16.xpose.msra.mxu1 %v1841_v30  ;;  %3963 = vmatprep.mubr.msk.bf16.mxu1 %vm4914_vm0, %v4913_v38 }
 0x451   : > { %3967 = vmatprep.subr.bf16.mxu1 %v4913_v38 }
 0x454   : > { %3940 = vmatmul.mubr.msk.bf16.vlgmr.msra.gmra.mrb[16].mxu0 %vm1454_vm1, %v1578_v31 }
 0x455   : > { %3945 = vmatprep.mubr.msk.bf16.mxu0 %vm4914_vm0, %v4913_v38 }
 0x457   : > { %3964 = vmatmul.mubr.msk.bf16.vlgmr.msra.gmra.mrb[12].mxu1 %vm1454_vm1, %v1833_v27 }
 0x458   : > { %3969 = vmatprep.mubr.msk.bf16.mxu1 %vm4914_vm0, %v4913_v38 }
 0x51f   : > { %v5466_v32 = vpop.f32.mrb[12].mxu0 }
 0x520   : > { %v3935_v33 = vpop.f32.mrb[13].mxu0 }
 0x521   : > { %v5468_v34 = vpop.f32.mrb[14].mxu0 }
 0x522   : > { %v3936_v35 = vpop.f32.mrb[15].mxu0  ;;  %v5470_v36 = vpop.f32.mrb[8].mxu1 }
 0x523   : > { %v3959_v37 = vpop.f32.mrb[9].mxu1 }
 0x524   : > { %v5472_v39 = vpop.f32.mrb[10].mxu1 }
 0x525   : > { %v3960_v42 = vpop.f32.mrb[11].mxu1 }
 0x527   : > { %v1622_v46 = vpop.f32.mrb[16].mxu0 }
 0x528   : > { %v3941_v47 = vpop.f32.mrb[17].mxu0  ;;  %v1629_v51 = vmul.f32 0.125, %v1622_v46 }
 0x529   : > { %v1625_v48 = vpop.f32.mrb[18].mxu0  ;;  %v4276_v47 = vld [vmem:[#allocation7] ss:$8 sps:$4 sm:$0xff]  }
 0x52a   : > { %v3942_v49 = vpop.f32.mrb[19].mxu0  ;;  %v1877_v50 = vpop.f32.mrb[12].mxu1  ;;  %v1630_v57 = vmul.f32 0.125, %v1625_v48  ;;  %v1631_v60 = vsub.f32 %v1629_v51, %v5412_v24  ;;  %v4278_v48 = vld [vmem:[#allocation7 + $0x4] ss:$8 sps:$4 sm:$0xff]  }
 0x52b   : > { %v1884_v52 = vmul.f32 0.125, %v1877_v50  ;;  %v3965_v38 = vpop.f32.mrb[13].mxu1  ;;  %v4281_v49 = vld [vmem:[#allocation7 + $0x14] ss:$8 sps:$4 sm:$0xff]   ;;  %v4279_v50 = vld [vmem:[#allocation7 + $0x10] ss:$8 sps:$4 sm:$0xff]  }
 0x52c   : > { %v1880_v53 = vpop.f32.mrb[14].mxu1  ;;  %v1633_v63 = vsel %vm1506_vm2, %v1631_v60, -inf  ;;  %v1632_v1 = vsub.f32 %v1630_v57, %v5414_v29  ;;  %v4284_v51 = vld [vmem:[#allocation7 + $0x24] ss:$8 sps:$4 sm:$0xff]   ;;  %v4287_v38 = vld [vmem:[#allocation7 + $0x34] ss:$8 sps:$4 sm:$0xff]  }
 0x52d   : > { %v1885_v54 = vmul.f32 0.125, %v1880_v53  ;;  %v3966_v55 = vpop.f32.mrb[15].mxu1  ;;  %v1886_v56 = vsub.f32 %v1884_v52, %v5412_v24  ;;  %v4282_v52 = vld [vmem:[#allocation7 + $0x20] ss:$8 sps:$4 sm:$0xff]   ;;  %v4285_v53 = vld [vmem:[#allocation7 + $0x30] ss:$8 sps:$4 sm:$0xff]  }
 0x52e   : > { %v1636_v2 = vsel %vm1506_vm2, %v1632_v1, -inf  ;;  %v4288_v55 = vld [vmem:[#allocation7 + $0x40] ss:$8 sps:$4 sm:$0xff]   ;;  %v4291_v57 = vld [vmem:[#allocation7 + $0x50] ss:$8 sps:$4 sm:$0xff]  }
 0x52f   : > { %v1888_v58 = vsel %vm1506_vm2, %v1886_v56, -inf  ;;  %v1887_v59 = vsub.f32 %v1885_v54, %v5414_v29  ;;  %v4290_v54 = vld [vmem:[#allocation7 + $0x44] ss:$8 sps:$4 sm:$0xff]  }
 0x530   : > { %1889 = vmax.xlane.f32.xlu0 %v1888_v58  ;;  %v4296_v58 = vld [vmem:[#allocation7 + $0x64] ss:$8 sps:$4 sm:$0xff]  }
 0x531   : > { %v1891_v62 = vsel %vm1506_vm2, %v1887_v59, -inf }
 0x532   : > { %1892 = vmax.xlane.f32.xlu1 %v1891_v62  ;;  %v4297_v62 = vld [vmem:[#allocation7 + $0x70] ss:$8 sps:$4 sm:$0xff]  }
 0x534   : > { %1634 = vmax.xlane.f32.xlu0 %v1633_v63  ;;  %v4302_v63 = vld [vmem:[#allocation7 + $0x84] ss:$8 sps:$4 sm:$0xff]  }
 0x538   : > { %1637 = vmax.xlane.f32.xlu0 %v1636_v2  ;;  %v4305_v2 = vld [vmem:[#allocation7 + $0x94] ss:$8 sps:$4 sm:$0xff]  }
 0x5bd   : > { %v1890_v3 = vpop.xlane.xlu0 %1889 }
 0x5be   : > { %v1894_v61 = vsub.f32 %v1886_v56, %v1890_v3  ;;  %v4293_v56 = vld [vmem:[#allocation7 + $0x54] ss:$8 sps:$4 sm:$0xff]   ;;  %v4303_v3 = vld [vmem:[#allocation7 + $0x90] ss:$8 sps:$4 sm:$0xff]  }
 0x5bf   : > { %v1893_v4 = vpop.xlane.xlu1 %1892 }
 0x5c0   : > { %v1896_v9 = vmul.f32 1.442695, %v1894_v61  ;;  %v1895_v10 = vsub.f32 %v1887_v59, %v1893_v4  ;;  %v4294_v59 = vld [vmem:[#allocation7 + $0x60] ss:$8 sps:$4 sm:$0xff]   ;;  %v4308_v61 = vld [vmem:[#allocation7 + $0xa4] ss:$8 sps:$4 sm:$0xff]  }
 0x5c1   : > { %v1635_v6 = vpop.xlane.xlu0 %1634  ;;  %v4306_v4 = vld [vmem:[#allocation7 + $0xa0] ss:$8 sps:$4 sm:$0xff]  }
 0x5c2   : > { %v1639_v8 = vsub.f32 %v1631_v60, %v1635_v6  ;;  %v1898_v13 = vmul.f32 1.442695, %v1895_v10  ;;  %v4299_v60 = vld [vmem:[#allocation7 + $0x74] ss:$8 sps:$4 sm:$0xff]   ;;  %v4312_v10 = vld [vmem:[#allocation7 + $0xc0] ss:$8 sps:$4 sm:$0xff]  }
 0x5c3   : > { %v4311_v6 = vld [vmem:[#allocation7 + $0xb4] ss:$8 sps:$4 sm:$0xff]  }
 0x5c4   : > { %v1641_v24 = vmul.f32 1.442695, %v1639_v8  ;;  %v4309_v8 = vld [vmem:[#allocation7 + $0xb0] ss:$8 sps:$4 sm:$0xff]  }
 0x5c5   : > { %v1638_v11 = vpop.xlane.xlu0 %1637 }
 0x5c6   : > { %4532 = vpow2.f32 %v1641_v24  ;;  %v1640_v12 = vsub.f32 %v1632_v1, %v1638_v11  ;;  %v4300_v1 = vld [vmem:[#allocation7 + $0x80] ss:$8 sps:$4 sm:$0xff]   ;;  %v4317_v24 = vld [vmem:[#allocation7 + $0xd4] ss:$8 sps:$4 sm:$0xff]   ;;  %v4315_v11 = vld [vmem:[#allocation7 + $0xd0] ss:$8 sps:$4 sm:$0xff]  }
 0x5c7   : > { %4534 = vpow2.f32 %v1896_v9  ;;  %v4314_v9 = vld [vmem:[#allocation7 + $0xc4] ss:$8 sps:$4 sm:$0xff]  }
 0x5c8   : > { %v1643_v14 = vmul.f32 1.442695, %v1640_v12  ;;  %v4318_v12 = vld [vmem:[#allocation7 + $0xe0] ss:$8 sps:$4 sm:$0xff]  }
 0x5ca   : > { %4536 = vpow2.f32 %v1643_v14 }
 0x5cb   : > { %4538 = vpow2.f32 %v1898_v13  ;;  %v4320_v13 = vld [vmem:[#allocation7 + $0xe4] ss:$8 sps:$4 sm:$0xff]  }
 0x5d0   : > { %v4533_v29 = vpop.eup %4532 }
 0x5d1   : > { %v1645_v15 = vsel %vm1506_vm2, %v4533_v29, 0.0  ;;  %v4535_v16 = vpop.eup %4534 }
 0x5d2   : > { %1646 = vadd.xlane.f32.xlu0 %v1645_v15  ;;  %v1900_v5 = vsel %vm1506_vm2, %v4535_v16, 0.0  ;;  %v4323_v15 = vld [vmem:[#allocation7 + $0xf4] ss:$8 sps:$4 sm:$0xff]  }
 0x5d4   : > { %v4537_v0 = vpop.eup %4536 }
 0x5d5   : > { %v1648_v7 = vsel %vm1506_vm2, %v4537_v0, 0.0  ;;  %v4539_v17 = vpop.eup %4538 }
 0x5d6   : > { %1901 = vadd.xlane.f32.xlu0 %v1900_v5  ;;  %1649 = vadd.xlane.f32.xlu1 %v1648_v7  ;;  %v1903_v18 = vsel %vm1506_vm2, %v4539_v17, 0.0 }
 0x5da   : > { %1904 = vadd.xlane.f32.xlu1 %v1903_v18 }
 0x5eb   : > { %1660 = vrot.lane.b32.xlu1 %v5402_v20, %s4915_s19 }
 0x5ec   : > { %1915 = vrot.lane.b32.xlu0 %v5404_v21, %s4915_s19 }
 0x65f   : > { %v1647_v19 = vpop.xlane.xlu0 %1646 }
 0x660   : > { %4540 = vrcp.f32 %v1647_v19 }
 0x663   : > { %v1650_v22 = vpop.xlane.xlu1 %1649  ;;  %v1902_v23 = vpop.xlane.xlu0 %1901 }
 0x664   : > { %4542 = vrcp.f32 %v1650_v22 }
 0x665   : > { %4544 = vrcp.f32 %v1902_v23 }
 0x667   : > { %v1905_v25 = vpop.xlane.xlu1 %1904  ;;  %v1916_v26 = vpop.permute.xlu0 %1915 }
 0x668   : > { %4546 = vrcp.f32 %v1905_v25  ;;  %3968 = vmatpush3.bf16.msra.mxu1 %v1916_v26 }
 0x66a   : > { %v4541_v27 = vpop.eup %4540 }
 0x66b   : > { %v1653_v28 = vmul.f32 %v4541_v27, %v4533_v29  ;;  %v1661_v20 = vpop.permute.xlu1 %1660 }
 0x66c   : > { %3944 = vmatpush3.bf16.msra.mxu0 %v1661_v20 }
 0x66d   : > { %3728 = vst.msk [vmem:[%s5440_s30 + $0x10] sm:$0xff] %vm1506_vm2, %v1653_v28  ;;  %2188 = vmatprep.subr.bf16.mxu0 %v4278_v48 }
 0x66e   : > { %v4543_v21 = vpop.eup %4542 }
 0x66f   : > { %v4545_v30 = vpop.eup %4544  ;;  %v1654_v31 = vmul.f32 %v4543_v21, %v4537_v0  ;;  %v4321_v0 = vld [vmem:[#allocation7 + $0xf0] ss:$8 sps:$4 sm:$0xff]  }
 0x670   : > { %v1908_v33 = vmul.f32 %v4545_v30, %v4535_v16 }
 0x671   : > { %3729 = vst.msk [vmem:[%s5440_s30 + $0x18] sm:$0xff] %vm1506_vm2, %v1654_v31  ;;  %v1658_v35 = vpack.c.bf16 %v1654_v31, %v1653_v28 }
 0x672   : > { %v4547_v37 = vpop.eup %4546  ;;  %3736 = vst.msk [vmem:[%s5440_s30 + $0x30] sm:$0xff] %vm1506_vm2, %v1908_v33 }
 0x673   : > { %v1909_v42 = vmul.f32 %v4547_v37, %v4539_v17  ;;  %3946 = vmatmul.mubr.msk.bf16.vlgmr.msra.gmra.mrb[20].mxu0 %vm1506_vm2, %v1658_v35 }
 0x674   : > { %2189 = vmatpush1.bf16.msra.mxu0 %v4276_v47 }
 0x675   : > { %3737 = vst.msk [vmem:[%s5440_s30 + $0x38] sm:$0xff] %vm1506_vm2, %v1909_v42  ;;  %v1913_v46 = vpack.c.bf16 %v1909_v42, %v1908_v33  ;;  %2190 = vmatprep.subr.bf16.mxu0 %v4281_v49  ;;  %s5724_s30 = sld [smem:[#allocation31_spill]] }
 0x677   : > { %3970 = vmatmul.mubr.msk.bf16.vlgmr.msra.gmra.mrb[16].mxu1 %vm1506_vm2, %v1913_v46 }
 0x678   : > { %2191 = vmatpush1.bf16.msra.mxu0 %v4279_v50 }
 0x679   : > { %2192 = vmatprep.subr.bf16.mxu0 %v4284_v51  ;;  %v4556_v51 = vld [vmem:[%s5342_s0] sm:$0xff] }
 0x67c   : > { %2193 = vmatpush1.bf16.msra.mxu0 %v4282_v52 }
 0x67d   : > { %2194 = vmatprep.subr.bf16.mxu0 %v4287_v38 }
 0x680   : > { %2195 = vmatpush1.bf16.msra.mxu0 %v4285_v53  ;;  %v4557_v53 = vld [vmem:[%s5342_s0 + $0x8] sm:$0xff] }
 0x681   : > { %2196 = vmatprep.subr.bf16.mxu0 %v4290_v54 }
 0x684   : > { %2197 = vmatpush1.bf16.msra.mxu0 %v4288_v55 }
 0x685   : > { %2198 = vmatprep.subr.bf16.mxu0 %v4293_v56  ;;  %v4558_v56 = vld [vmem:[%s5342_s0 + $0x10] sm:$0xff] }
 0x688   : > { %2199 = vmatpush1.bf16.msra.mxu0 %v4291_v57 }
 0x689   : > { %2200 = vmatprep.subr.bf16.mxu0 %v4296_v58  ;;  %v4559_v58 = vld [vmem:[%s5342_s0 + $0x18] sm:$0xff]  ;;  %s4917_s0 = smov [#allocation17]  }
 0x68c   : > { %2201 = vmatpush1.bf16.msra.mxu0 %v4294_v59 }
 0x68d   : > { %2202 = vmatprep.subr.bf16.mxu0 %v4299_v60 }
 0x690   : > { %2203 = vmatpush1.bf16.msra.mxu0 %v4297_v62 }
 0x691   : > { %2204 = vmatprep.subr.bf16.mxu0 %v4302_v63  ;;  %v4916_v63 = vmov 0  }
 0x692   : > { %4130 = vset.pattern.permute.xlu0 %v4916_v63  ;;  %4131 = vset.pattern.permute.xlu1 %v4916_v63  ;;  %v4387_v63 = vld [vmem:[#allocation10 + $0x148] ss:$16 sps:$4 sm:$0xff]  }
 0x694   : > { %2205 = vmatpush1.bf16.msra.mxu0 %v4300_v1 }
 0x695   : > { %2206 = vmatprep.subr.bf16.mxu0 %v4305_v2  ;;  %v4324_v2 = vld [vmem:[#allocation10] ss:$16 sps:$4 sm:$0xff]  }
 0x698   : > { %2207 = vmatpush1.bf16.msra.mxu0 %v4303_v3  ;;  %v4326_v3 = vld [vmem:[#allocation10 + $0x4] ss:$16 sps:$4 sm:$0xff]  }
 0x699   : > { %2208 = vmatprep.subr.bf16.mxu0 %v4308_v61  ;;  %v4327_v61 = vld [vmem:[#allocation10 + $0x8] ss:$16 sps:$4 sm:$0xff]   ;;  %2722 = vmatprep.subr.bf16.mxu1 %v4326_v3  ;;  %v4390_v3 = vld [vmem:[#allocation10 + $0x160] ss:$16 sps:$4 sm:$0xff]  }
 0x69a   : > { %2723 = vmatpush1.bf16.msra.mxu1 %v4324_v2  ;;  %v4392_v2 = vld [vmem:[#allocation10 + $0x164] ss:$16 sps:$4 sm:$0xff]  }
 0x69c   : > { %2209 = vmatpush1.bf16.msra.mxu0 %v4306_v4  ;;  %v4329_v4 = vld [vmem:[#allocation10 + $0xc] ss:$16 sps:$4 sm:$0xff]  }
 0x69d   : > { %2210 = vmatprep.subr.bf16.mxu0 %v4311_v6  ;;  %v4332_v6 = vld [vmem:[#allocation10 + $0x24] ss:$16 sps:$4 sm:$0xff]  }
 0x69e   : > { %2724 = vmatprep.subr.bf16.mxu1 %v4332_v6  ;;  %v4398_v6 = vld [vmem:[#allocation10 + $0x184] ss:$16 sps:$4 sm:$0xff]  }
 0x6a0   : > { %2211 = vmatpush1.bf16.msra.mxu0 %v4309_v8  ;;  %v4335_v8 = vld [vmem:[#allocation10 + $0x2c] ss:$16 sps:$4 sm:$0xff]  }
 0x6a1   : > { %2212 = vmatprep.subr.bf16.mxu0 %v4314_v9  ;;  %v4330_v9 = vld [vmem:[#allocation10 + $0x20] ss:$16 sps:$4 sm:$0xff]  }
 0x6a2   : > { %2725 = vmatpush1.bf16.msra.mxu1 %v4330_v9  ;;  %v4396_v9 = vld [vmem:[#allocation10 + $0x180] ss:$16 sps:$4 sm:$0xff]  }
 0x6a4   : > { %2213 = vmatpush1.bf16.msra.mxu0 %v4312_v10  ;;  %v4333_v10 = vld [vmem:[#allocation10 + $0x28] ss:$16 sps:$4 sm:$0xff]  }
 0x6a5   : > { %2214 = vmatprep.subr.bf16.mxu0 %v4317_v24  ;;  %v4338_v24 = vld [vmem:[#allocation10 + $0x44] ss:$16 sps:$4 sm:$0xff]  }
 0x6a6   : > { %2726 = vmatprep.subr.bf16.mxu1 %v4338_v24  ;;  %v4404_v24 = vld [vmem:[#allocation10 + $0x1a4] ss:$16 sps:$4 sm:$0xff]  }
 0x6a8   : > { %2215 = vmatpush1.bf16.msra.mxu0 %v4315_v11  ;;  %v4341_v11 = vld [vmem:[#allocation10 + $0x4c] ss:$16 sps:$4 sm:$0xff]  }
 0x6a9   : > { %2216 = vmatprep.subr.bf16.mxu0 %v4320_v13  ;;  %v4339_v13 = vld [vmem:[#allocation10 + $0x48] ss:$16 sps:$4 sm:$0xff]  }
 0x6ac   : > { %2217 = vmatpush1.bf16.msra.mxu0 %v4318_v12  ;;  %v4336_v12 = vld [vmem:[#allocation10 + $0x40] ss:$16 sps:$4 sm:$0xff]  }
 0x6ad   : > { %2218 = vmatprep.subr.bf16.mxu0 %v4323_v15  ;;  %2727 = vmatpush1.bf16.msra.mxu1 %v4336_v12  ;;  %v4342_v15 = vld [vmem:[#allocation10 + $0x60] ss:$16 sps:$4 sm:$0xff]  }
 0x6ae   : > { %v4402_v12 = vld [vmem:[#allocation10 + $0x1a0] ss:$16 sps:$4 sm:$0xff]  }
 0x6b0   : > { %2219 = vmatpush1.bf16.msra.mxu0 %v4321_v0  ;;  %v4350_v0 = vld [vmem:[#allocation10 + $0x84] ss:$16 sps:$4 sm:$0xff]  }
 0x6b1   : > { %2765 = vmatprep.subr.bf16.mxu0 %v4329_v4  ;;  %v4395_v4 = vld [vmem:[#allocation10 + $0x16c] ss:$16 sps:$4 sm:$0xff]  }
 0x746   : > { %v1700_v14 = vpop.f32.mrb[20].mxu0 }
 0x747   : > { %v3947_v29 = vpop.f32.mrb[21].mxu0 }
 0x748   : > { %v1703_v16 = vpop.f32.mrb[22].mxu0  ;;  %v4347_v29 = vld [vmem:[#allocation10 + $0x6c] ss:$16 sps:$4 sm:$0xff]  }
 0x749   : > { %v4125_v5 = vpack.i.bf16 %v1703_v16, %v1700_v14  ;;  %v3948_v7 = vpop.f32.mrb[23].mxu0  ;;  %v4344_v14 = vld [vmem:[#allocation10 + $0x64] ss:$16 sps:$4 sm:$0xff]   ;;  %v4345_v16 = vld [vmem:[#allocation10 + $0x68] ss:$16 sps:$4 sm:$0xff]  }
 0x74a   : > { %v1955_v17 = vpop.f32.mrb[16].mxu1  ;;  %2728 = vmatprep.subr.bf16.mxu1 %v4344_v14  ;;  %v4348_v7 = vld [vmem:[#allocation10 + $0x80] ss:$16 sps:$4 sm:$0xff]  }
 0x74b   : > { %v3971_v18 = vpop.f32.mrb[17].mxu1  ;;  %2729 = vmatpush1.bf16.msra.mxu1 %v4342_v15  ;;  %v4408_v14 = vld [vmem:[#allocation10 + $0x1c0] ss:$16 sps:$4 sm:$0xff]   ;;  %v4411_v15 = vld [vmem:[#allocation10 + $0x1c8] ss:$16 sps:$4 sm:$0xff]  }
 0x74c   : > { %v1958_v19 = vpop.f32.mrb[18].mxu1  ;;  %2730 = vmatprep.subr.bf16.mxu1 %v4350_v0  ;;  %v4356_v18 = vld [vmem:[#allocation10 + $0xa4] ss:$16 sps:$4 sm:$0xff]   ;;  %v4414_v0 = vld [vmem:[#allocation10 + $0x1e0] ss:$16 sps:$4 sm:$0xff]  }
 0x74d   : > { %v4120_v22 = vpack.i.bf16 %v1958_v19, %v1955_v17  ;;  %v3972_v23 = vpop.f32.mrb[19].mxu1  ;;  %v4351_v17 = vld [vmem:[#allocation10 + $0x88] ss:$16 sps:$4 sm:$0xff]   ;;  %v4359_v19 = vld [vmem:[#allocation10 + $0xac] ss:$16 sps:$4 sm:$0xff]  }
 0x74e   : > { %v4357_v23 = vld [vmem:[#allocation10 + $0xa8] ss:$16 sps:$4 sm:$0xff]  }
 0x74f   : > { %4121 = vrot.lane.b32.xlu1 %v4120_v22, %s4915_s19  ;;  %2731 = vmatpush1.bf16.msra.mxu1 %v4348_v7  ;;  %v4354_v22 = vld [vmem:[#allocation10 + $0xa0] ss:$16 sps:$4 sm:$0xff]   ;;  %v4417_v7 = vld [vmem:[#allocation10 + $0x1e8] ss:$16 sps:$4 sm:$0xff]  }
 0x750   : > { %2732 = vmatprep.subr.bf16.mxu1 %v4356_v18  ;;  %v4422_v18 = vld [vmem:[#allocation11 + $0x4] ss:$8 sps:$4 sm:$0xff]  }
 0x753   : > { %4126 = vrot.lane.b32.xlu1 %v4125_v5, %s4915_s19  ;;  %s5722_s19 = sld [smem:[#allocation25_spill]]  ;;  %v4353_v5 = vld [vmem:[#allocation10 + $0x8c] ss:$16 sps:$4 sm:$0xff]   ;;  %2733 = vmatpush1.bf16.msra.mxu1 %v4354_v22 }
 0x759   : > { %s5535_s2 = scalar_lea.vmem %s5722_s19, %s3906_s20  ;;  %s5725_s19 = sld [smem:[#allocation32_spill]] }
 0x75a   : > { %v709_v1 = vld [vmem:[%s5535_s2 + $0x8] sm:$0xff] }
 0x7c1   : > { %v4122_v25 = vpop.permute.xlu1 %4121 }
 0x7c2   : > { %v4124_v26 = vunpack.i.h.bf16 %v4122_v25  ;;  %v4123_v27 = vunpack.i.l.bf16 %v4122_v25  ;;  %v4362_v25 = vld [vmem:[#allocation10 + $0xc4] ss:$16 sps:$4 sm:$0xff]  }
 0x7c3   : > { %2734 = vmatprep.subr.bf16.mxu1 %v4362_v25 }
 0x7c4   : > { %v1980_v28 = vsel %vm1454_vm1, %v5470_v36, %v4123_v27  ;;  %v1981_v20 = vsel %vm1454_vm1, %v5472_v39, %v4124_v26  ;;  %v2016_v36 = vld [vmem:[%s5721_s6] sm:$0x3]  ;;  %v4360_v27 = vld [vmem:[#allocation10 + $0xc0] ss:$16 sps:$4 sm:$0xff]   ;;  %s678_s6 = scalar_lea.vmem [#allocation17], %s3622_s10 }
 0x7c5   : > { %v4127_v21 = vpop.permute.xlu1 %4126  ;;  %v1983_v30 = vpack.c.bf16 %v1981_v20, %v1980_v28  ;;  %v2021_v39 = vrot.slane %v2016_v36, %v5367_v44  ;;  %v2025_v46 = vrot.slane %v2016_v36, %v5370_v45  ;;  %v4365_v26 = vld [vmem:[#allocation10 + $0xcc] ss:$16 sps:$4 sm:$0xff]   ;;  %v4363_v28 = vld [vmem:[#allocation10 + $0xc8] ss:$16 sps:$4 sm:$0xff]   ;;  %v4368_v20 = vld [vmem:[#allocation10 + $0xe4] ss:$16 sps:$4 sm:$0xff]   ;;  %2735 = vmatpush1.bf16.msra.mxu1 %v4360_v27 }
 0x7c6   : > { %v4129_v31 = vunpack.i.h.bf16 %v4127_v21  ;;  %v4128_v33 = vunpack.i.l.bf16 %v4127_v21  ;;  %v4371_v21 = vld [vmem:[#allocation10 + $0xec] ss:$16 sps:$4 sm:$0xff]   ;;  %2736 = vmatprep.subr.bf16.mxu1 %v4368_v20  ;;  %s3397_s20 = sshll.u32 %s678_s6, 4  ;;  %s5621_s20 = int_to_ptr.vmem [resolvable:$true] %s3397_s20 }
 0x7c7   : > { %2220 = vmatprep.mubr.bf16.mxu0 %v1983_v30  ;;  %v4366_v30 = vld [vmem:[#allocation10 + $0xe0] ss:$16 sps:$4 sm:$0xff]   ;;  %s4814_s28 = scalar_lea.vmem %s5621_s20, 512 }
 0x7c8   : > { %v1979_v35 = vsel %vm1454_vm1, %v5468_v34, %v4129_v31  ;;  %v1978_v37 = vsel %vm1454_vm1, %v5466_v32, %v4128_v33  ;;  %v4369_v31 = vld [vmem:[#allocation10 + $0xe8] ss:$16 sps:$4 sm:$0xff]   ;;  %v4374_v33 = vld [vmem:[#allocation10 + $0x104] ss:$16 sps:$4 sm:$0xff]   ;;  %p4815_p1 = scmp.ne.s32.totalorder %s5621_s20, %s4814_s28 }
 0x7c9   : > { %v1982_v42 = vpack.c.bf16 %v1979_v35, %v1978_v37  ;;  %v4377_v35 = vld [vmem:[#allocation10 + $0x10c] ss:$16 sps:$4 sm:$0xff]   ;;  %2737 = vmatpush1.bf16.msra.mxu1 %v4366_v30  ;;  %v4372_v37 = vld [vmem:[#allocation10 + $0x100] ss:$16 sps:$4 sm:$0xff]  }
 0x7ca   : > { %2738 = vmatprep.subr.bf16.mxu1 %v4374_v33  ;;  %p4816_p12 = pnand %p4815_p1, %p5726_p11 }
 0x7cb   : > { %2221 = vmatmul.mubr.bf16.vlgmr.msra.gmra.mrb[24].mxu0 %v1982_v42  ;;  %v4375_v42 = vld [vmem:[#allocation10 + $0x108] ss:$16 sps:$4 sm:$0xff]  }
 0x7cc   : > { %2766 = vmatpush1.bf16.msra.mxu0 %v4327_v61  ;;  %v4393_v61 = vld [vmem:[#allocation10 + $0x168] ss:$16 sps:$4 sm:$0xff]   ;;  %p4817_p13 = pneg %p4816_p12 }
 0x7cd   : > { %2767 = vmatprep.subr.bf16.mxu0 %v4335_v8  ;;  %2739 = vmatpush1.bf16.msra.mxu1 %v4372_v37  ;;  %v4401_v8 = vld [vmem:[#allocation10 + $0x18c] ss:$16 sps:$4 sm:$0xff]  }
 0x7d0   : > { %2768 = vmatpush1.bf16.msra.mxu0 %v4333_v10  ;;  %v4399_v10 = vld [vmem:[#allocation10 + $0x188] ss:$16 sps:$4 sm:$0xff]  }
 0x7d1   : > { %2769 = vmatprep.subr.bf16.mxu0 %v4341_v11  ;;  %v4407_v11 = vld [vmem:[#allocation10 + $0x1ac] ss:$16 sps:$4 sm:$0xff]  }
 0x7d4   : > { %2770 = vmatpush1.bf16.msra.mxu0 %v4339_v13  ;;  %v4405_v13 = vld [vmem:[#allocation10 + $0x1a8] ss:$16 sps:$4 sm:$0xff]  }
 0x7d5   : > { %2771 = vmatprep.subr.bf16.mxu0 %v4347_v29  ;;  %v4410_v29 = vld [vmem:[#allocation10 + $0x1c4] ss:$16 sps:$4 sm:$0xff]  }
 0x7d8   : > { %2772 = vmatpush1.bf16.msra.mxu0 %v4345_v16  ;;  %v4413_v16 = vld [vmem:[#allocation10 + $0x1cc] ss:$16 sps:$4 sm:$0xff]  }
 0x7d9   : > { %2773 = vmatprep.subr.bf16.mxu0 %v4353_v5  ;;  %v4416_v5 = vld [vmem:[#allocation10 + $0x1e4] ss:$16 sps:$4 sm:$0xff]  }
 0x7dc   : > { %2774 = vmatpush1.bf16.msra.mxu0 %v4351_v17  ;;  %v4419_v17 = vld [vmem:[#allocation10 + $0x1ec] ss:$16 sps:$4 sm:$0xff]  }
 0x7dd   : > { %2775 = vmatprep.subr.bf16.mxu0 %v4359_v19 }
 0x7e0   : > { %2776 = vmatpush1.bf16.msra.mxu0 %v4357_v23 }
 0x7e1   : > { %2777 = vmatprep.subr.bf16.mxu0 %v4365_v26 }
 0x7e4   : > { %2778 = vmatpush1.bf16.msra.mxu0 %v4363_v28  ;;  %v2268_v28 = vld [vmem:[%s5723_s18] sm:$0x3]  ;;  %s4818_s18 = sshll.u32 %s4917_s0, 4  ;;  %s4819_s18 = int_to_ptr.vmem [resolvable:$false] %s4818_s18 }
 0x7e5   : > { %2779 = vmatprep.subr.bf16.mxu0 %v4371_v21  ;;  %v2273_v20 = vrot.slane %v2268_v28, %v5367_v44  ;;  %v2277_v21 = vrot.slane %v2268_v28, %v5370_v45  ;;  %v4470_v28 = vld [vmem:[#allocation11 + $0x104] ss:$8 sps:$4 sm:$0xff]   ;;  %s4820_s26 = scalar_lea.vmem %s4819_s18, 1024  ;;  %p4821_p8 = scmp.lt.s32.totalorder %s5621_s20, %s4819_s18 }
 0x7e6   : > { %p4822_p7 = scmp.lt.s32.totalorder %s4820_s26, %s4814_s28 }
 0x7e8   : > { %2780 = vmatpush1.bf16.msra.mxu0 %v4369_v31  ;;  %v2284_v31 = vld [vmem:[#allocation8] sm:$0x3]  ;;  %p4823_p9 = por %p4822_p7, %p4821_p8 }
 0x7e9   : > { %2781 = vmatprep.subr.bf16.mxu0 %v4377_v35 }
 0x7ea   : > { %p4824_p4 = pnand %p4823_p9, %p4817_p13 }
 0x7ec   : > { %2782 = vmatpush1.bf16.msra.mxu0 %v4375_v42 }
 0x89e   : > { %v2222_v47 = vpop.f32.mrb[24].mxu0 }
 0x89f   : > { %v2223_v48 = vadd.f32 %v2222_v47, %v2021_v39  ;;  %v2224_v49 = vpop.f32.mrb[25].mxu0 }
 0x8a0   : > { %v2225_v34 = vadd.f32 %v2224_v49, %v2025_v46  ;;  %v2226_v50 = vpop.f32.mrb[26].mxu0 }
 0x8a1   : > { %v5516_v52 = vadd.f32 %v4556_v51, %v2223_v48  ;;  %v2227_v32 = vadd.f32 %v2226_v50, %v2021_v39  ;;  %v2228_v38 = vpop.f32.mrb[27].mxu0 }
 0x8a2   : > { %v5519_v54 = vadd.f32 %v4557_v53, %v2225_v34  ;;  %v2229_v55 = vadd.f32 %v2228_v38, %v2025_v46 }
 0x8a3   : > { %v5522_v57 = vadd.f32 %v4558_v56, %v2227_v32  ;;  %v4383_v56 = vld [vmem:[#allocation10 + $0x12c] ss:$16 sps:$4 sm:$0xff]  }
 0x8a4   : > { %v5525_v59 = vadd.f32 %v4559_v58, %v2229_v55  ;;  %v2235_v60 = vadd.f32 %v5519_v54, %v5516_v52  ;;  %v4380_v55 = vld [vmem:[#allocation10 + $0x124] ss:$16 sps:$4 sm:$0xff]   ;;  %v4381_v58 = vld [vmem:[#allocation10 + $0x128] ss:$16 sps:$4 sm:$0xff]   ;;  %2783 = vmatprep.subr.bf16.mxu0 %v4383_v56 }
 0x8a5   : > { %2740 = vmatprep.subr.bf16.mxu1 %v4380_v55  ;;  %2784 = vmatpush1.bf16.msra.mxu0 %v4381_v58 }
 0x8a6   : > { %2236 = vadd.xlane.f32.xlu0 %v2235_v60  ;;  %v2238_v62 = vadd.f32 %v5525_v59, %v5522_v57  ;;  %v4389_v60 = vld [vmem:[#allocation10 + $0x14c] ss:$16 sps:$4 sm:$0xff]  }
 0x8a7   : > { %2785 = vmatprep.subr.bf16.mxu0 %v4389_v60  ;;  %v4420_v60 = vld [vmem:[#allocation11] ss:$8 sps:$4 sm:$0xff]  }
 0x8a8   : > { %2239 = vadd.xlane.f32.xlu1 %v2238_v62  ;;  %v4384_v62 = vld [vmem:[#allocation10 + $0x140] ss:$16 sps:$4 sm:$0xff]  }
 0x8a9   : > { %2786 = vmatpush1.bf16.msra.mxu0 %v4387_v63  ;;  %v4423_v63 = vld [vmem:[#allocation11 + $0x10] ss:$8 sps:$4 sm:$0xff]  }
 0x8aa   : > { %2787 = vmatprep.subr.bf16.mxu0 %v4395_v4  ;;  %v4434_v4 = vld [vmem:[#allocation11 + $0x44] ss:$8 sps:$4 sm:$0xff]  }
 0x8ad   : > { %2788 = vmatpush1.bf16.msra.mxu0 %v4393_v61  ;;  %v4429_v61 = vld [vmem:[#allocation11 + $0x30] ss:$8 sps:$4 sm:$0xff]  }
 0x8ae   : > { %2789 = vmatprep.subr.bf16.mxu0 %v4401_v8  ;;  %v4437_v8 = vld [vmem:[#allocation11 + $0x54] ss:$8 sps:$4 sm:$0xff]  }
 0x8b1   : > { %2790 = vmatpush1.bf16.msra.mxu0 %v4399_v10  ;;  %v4440_v10 = vld [vmem:[#allocation11 + $0x64] ss:$8 sps:$4 sm:$0xff]  }
 0x8b2   : > { %2791 = vmatprep.subr.bf16.mxu0 %v4407_v11  ;;  %v4443_v11 = vld [vmem:[#allocation11 + $0x74] ss:$8 sps:$4 sm:$0xff]  }
 0x8b5   : > { %2792 = vmatpush1.bf16.msra.mxu0 %v4405_v13  ;;  %v4446_v13 = vld [vmem:[#allocation11 + $0x84] ss:$8 sps:$4 sm:$0xff]  }
 0x8b6   : > { %2793 = vmatprep.subr.bf16.mxu0 %v4413_v16  ;;  %v4452_v16 = vld [vmem:[#allocation11 + $0xa4] ss:$8 sps:$4 sm:$0xff]  }
 0x8b9   : > { %2307 = vperm.xlu1 %4131, %v709_v1   ;;  %v708_v1 = vld [vmem:[%s5535_s2] sm:$0xff]  ;;  %2794 = vmatpush1.bf16.msra.mxu0 %v4411_v15  ;;  %v4447_v15 = vld [vmem:[#allocation11 + $0x90] ss:$8 sps:$4 sm:$0xff]   ;;  %s5619_s2 = scalar_lea.hbm %s5725_s19, %s3908_s8 }
 0x8ba   : > { %2795 = vmatprep.subr.bf16.mxu0 %v4419_v17  ;;  %v4458_v17 = vld [vmem:[#allocation11 + $0xc4] ss:$8 sps:$4 sm:$0xff]  }
 0x8bd   : > { %2796 = vmatpush1.bf16.msra.mxu0 %v4417_v7  ;;  %v4453_v7 = vld [vmem:[#allocation11 + $0xb0] ss:$8 sps:$4 sm:$0xff]  }
 0x933   : > { %v2237_v36 = vpop.xlane.xlu0 %2236 }
 0x934   : > { %v2242_v39 = vmul.f32 0.00390625, %v2237_v36  ;;  %v2289_v36 = vrot.slane %v2284_v31, %v5367_v44 }
 0x935   : > { %v2240_v46 = vpop.xlane.xlu1 %2239 }
 0x936   : > { %v5539_v47 = vsub.f32 %v5516_v52, %v2242_v39  ;;  %v5542_v48 = vsub.f32 %v5519_v54, %v2242_v39  ;;  %v2243_v49 = vmul.f32 0.00390625, %v2240_v46  ;;  %v2293_v39 = vrot.slane %v2284_v31, %v5370_v45 }
 0x938   : > { %v5545_v34 = vsub.f32 %v5522_v57, %v2243_v49  ;;  %v5548_v50 = vsub.f32 %v5525_v59, %v2243_v49  ;;  %v2248_v51 = vmul.f32 %v5539_v47, %v5539_v47  ;;  %v2249_v32 = vmul.f32 %v5542_v48, %v5542_v48  ;;  %v4378_v57 = vld [vmem:[#allocation10 + $0x120] ss:$16 sps:$4 sm:$0xff]   ;;  %v4386_v59 = vld [vmem:[#allocation10 + $0x144] ss:$16 sps:$4 sm:$0xff]  }
 0x939   : > { %2741 = vmatpush1.bf16.msra.mxu1 %v4378_v57 }
 0x93a   : > { %v2252_v38 = vadd.f32 %v2249_v32, %v2248_v51  ;;  %v2250_v52 = vmul.f32 %v5545_v34, %v5545_v34  ;;  %v2251_v53 = vmul.f32 %v5548_v50, %v5548_v50  ;;  %2742 = vmatprep.subr.bf16.mxu1 %v4386_v59 }
 0x93c   : > { %2253 = vadd.xlane.f32.xlu0 %v2252_v38  ;;  %v2255_v54 = vadd.f32 %v2251_v53, %v2250_v52 }
 0x93d   : > { %2743 = vmatpush1.bf16.msra.mxu1 %v4384_v62  ;;  %v4425_v62 = vld [vmem:[#allocation11 + $0x14] ss:$8 sps:$4 sm:$0xff]  }
 0x93e   : > { %2744 = vmatprep.subr.bf16.mxu1 %v4392_v2  ;;  %v4426_v2 = vld [vmem:[#allocation11 + $0x20] ss:$8 sps:$4 sm:$0xff]  }
 0x940   : > { %2256 = vadd.xlane.f32.xlu0 %v2255_v54 }
 0x941   : > { %2745 = vmatpush1.bf16.msra.mxu1 %v4390_v3  ;;  %v4431_v3 = vld [vmem:[#allocation11 + $0x34] ss:$8 sps:$4 sm:$0xff]  }
 0x942   : > { %2746 = vmatprep.subr.bf16.mxu1 %v4398_v6  ;;  %v4432_v6 = vld [vmem:[#allocation11 + $0x40] ss:$8 sps:$4 sm:$0xff]  }
 0x945   : > { %2747 = vmatpush1.bf16.msra.mxu1 %v4396_v9  ;;  %v4435_v9 = vld [vmem:[#allocation11 + $0x50] ss:$8 sps:$4 sm:$0xff]  }
 0x946   : > { %2748 = vmatprep.subr.bf16.mxu1 %v4404_v24  ;;  %v4438_v24 = vld [vmem:[#allocation11 + $0x60] ss:$8 sps:$4 sm:$0xff]  }
 0x949   : > { %2749 = vmatpush1.bf16.msra.mxu1 %v4402_v12  ;;  %v4441_v12 = vld [vmem:[#allocation11 + $0x70] ss:$8 sps:$4 sm:$0xff]  }
 0x94a   : > { %2750 = vmatprep.subr.bf16.mxu1 %v4410_v29  ;;  %v4449_v29 = vld [vmem:[#allocation11 + $0x94] ss:$8 sps:$4 sm:$0xff]  }
 0x94d   : > { %2751 = vmatpush1.bf16.msra.mxu1 %v4408_v14  ;;  %v4444_v14 = vld [vmem:[#allocation11 + $0x80] ss:$8 sps:$4 sm:$0xff]  }
 0x94e   : > { %2752 = vmatprep.subr.bf16.mxu1 %v4416_v5  ;;  %v4455_v5 = vld [vmem:[#allocation11 + $0xb4] ss:$8 sps:$4 sm:$0xff]  }
 0x951   : > { %2753 = vmatpush1.bf16.msra.mxu1 %v4414_v0  ;;  %v4450_v0 = vld [vmem:[#allocation11 + $0xa0] ss:$8 sps:$4 sm:$0xff]  }
 0x952   : > { %3216 = vmatprep.subr.bf16.mxu1 %v4422_v18  ;;  %v4456_v18 = vld [vmem:[#allocation11 + $0xc0] ss:$8 sps:$4 sm:$0xff]  }
 0x956   : > { %2302 = vperm.xlu0 %4130, %v708_v1   ;;  %v4428_v1 = vld [vmem:[#allocation11 + $0x24] ss:$8 sps:$4 sm:$0xff]  }
 0x9c9   : > { %v2254_v19 = vpop.xlane.xlu0 %2253 }
 0x9ca   : > { %v2258_v22 = vmul.f32 0.00390625, %v2254_v19  ;;  %v4461_v19 = vld [vmem:[#allocation11 + $0xd4] ss:$8 sps:$4 sm:$0xff]  }
 0x9cc   : > { %v2260_v23 = vadd.f32 1e-05, %v2258_v22  ;;  %v4459_v22 = vld [vmem:[#allocation11 + $0xd0] ss:$8 sps:$4 sm:$0xff]  }
 0x9cd   : > { %v2257_v25 = vpop.xlane.xlu0 %2256 }
 0x9ce   : > { %4548 = vrsqrt.f32 %v2260_v23  ;;  %v2259_v26 = vmul.f32 0.00390625, %v2257_v25  ;;  %v4464_v23 = vld [vmem:[#allocation11 + $0xe4] ss:$8 sps:$4 sm:$0xff]   ;;  %v4462_v25 = vld [vmem:[#allocation11 + $0xe0] ss:$8 sps:$4 sm:$0xff]  }
 0x9d0   : > { %v2261_v27 = vadd.f32 1e-05, %v2259_v26  ;;  %v4467_v26 = vld [vmem:[#allocation11 + $0xf4] ss:$8 sps:$4 sm:$0xff]  }
 0x9d2   : > { %4550 = vrsqrt.f32 %v2261_v27  ;;  %v4465_v27 = vld [vmem:[#allocation11 + $0xf0] ss:$8 sps:$4 sm:$0xff]  }
 0x9d5   : > { %v5570_v54 = vpop.permute.xlu0 %2302 }
 0x9d8   : > { %v4549_v30 = vpop.eup %4548 }
 0x9d9   : > { %v2264_v33 = vmul.f32 %v4549_v30, %v5539_v47  ;;  %v2265_v35 = vmul.f32 %v4549_v30, %v5542_v48  ;;  %v5572_v47 = vpop.permute.xlu1 %2307 }
 0x9db   : > { %v2280_v37 = vmul.f32 %v2273_v20, %v2264_v33  ;;  %v2281_v42 = vmul.f32 %v2277_v21, %v2265_v35 }
 0x9dc   : > { %v4551_v46 = vpop.eup %4550 }
 0x9dd   : > { %v2266_v49 = vmul.f32 %v4551_v46, %v5545_v34  ;;  %v2267_v51 = vmul.f32 %v4551_v46, %v5548_v50  ;;  %v2296_v32 = vadd.f32 %v2289_v36, %v2280_v37  ;;  %v2297_v38 = vadd.f32 %v2293_v39, %v2281_v42 }
 0x9df   : > { %v2282_v52 = vmul.f32 %v2273_v20, %v2266_v49  ;;  %v2283_v53 = vmul.f32 %v2277_v21, %v2267_v51  ;;  %v5575_v56 = vmul.f32 %v5570_v54, %v2296_v32  ;;  %v5578_v57 = vmul.f32 %v5570_v54, %v2297_v38  ;;  %v2380_v20 = vld [vmem:[%s5724_s30] sm:$0xf] }
 0x9e0   : > { %v2385_v21 = vrot.slane %v2380_v20, %v5367_v44  ;;  %v2393_v30 = vrot.slane %v2380_v20, %v820_v41  ;;  %v2389_v31 = vrot.slane %v2380_v20, %v5370_v45  ;;  %v2397_v33 = vrot.slane %v2380_v20, %v824_v43  ;;  %v4506_v20 = vld [vmem:[#allocation11 + $0x1c4] ss:$8 sps:$4 sm:$0xff]  }
 0x9e1   : > { %v2298_v48 = vadd.f32 %v2289_v36, %v2282_v52  ;;  %v2299_v55 = vadd.f32 %v2293_v39, %v2283_v53 }
 0x9e3   : > { %v5581_v34 = vmul.f32 %v5572_v47, %v2298_v48  ;;  %v5584_v50 = vmul.f32 %v5572_v47, %v2299_v55 }
 0x9e5   : > { %v2315_v58 = vpack.c.bf16 %v5584_v50, %v5578_v57  ;;  %v2314_v59 = vpack.c.bf16 %v5581_v34, %v5575_v56 }
 0x9e7   : > { %2754 = vmatprep.mubr.bf16.mxu1 %v2315_v58  ;;  %2797 = vmatprep.mubr.bf16.mxu0 %v2315_v58 }
 0x9e8   : > { %2755 = vmatmul.mubr.bf16.vlgmr.msra.gmra.mrb[20].mxu1 %v2314_v59  ;;  %2798 = vmatmul.mubr.bf16.vlgmr.msra.gmra.mrb[28].mxu0 %v2314_v59 }
 0x9e9   : > { %3217 = vmatpush1.bf16.msra.mxu1 %v4420_v60 }
 0x9ea   : > { %3218 = vmatprep.subr.bf16.mxu1 %v4425_v62 }
 0x9ed   : > { %3219 = vmatpush1.bf16.msra.mxu1 %v4423_v63 }
 0x9ee   : > { %3220 = vmatprep.subr.bf16.mxu1 %v4428_v1 }
 0x9f1   : > { %3221 = vmatpush1.bf16.msra.mxu1 %v4426_v2 }
 0x9f2   : > { %3222 = vmatprep.subr.bf16.mxu1 %v4431_v3 }
 0x9f5   : > { %3223 = vmatpush1.bf16.msra.mxu1 %v4429_v61 }
 0x9f6   : > { %3224 = vmatprep.subr.bf16.mxu1 %v4434_v4 }
 0x9f9   : > { %3225 = vmatpush1.bf16.msra.mxu1 %v4432_v6 }
 0x9fa   : > { %3226 = vmatprep.subr.bf16.mxu1 %v4437_v8  ;;  %v4468_v8 = vld [vmem:[#allocation11 + $0x100] ss:$8 sps:$4 sm:$0xff]  }
 0x9fd   : > { %3227 = vmatpush1.bf16.msra.mxu1 %v4435_v9  ;;  %v4473_v9 = vld [vmem:[#allocation11 + $0x114] ss:$8 sps:$4 sm:$0xff]  }
 0x9fe   : > { %3228 = vmatprep.subr.bf16.mxu1 %v4440_v10  ;;  %v4471_v10 = vld [vmem:[#allocation11 + $0x110] ss:$8 sps:$4 sm:$0xff]  }
 0xa01   : > { %3229 = vmatpush1.bf16.msra.mxu1 %v4438_v24  ;;  %v4476_v24 = vld [vmem:[#allocation11 + $0x124] ss:$8 sps:$4 sm:$0xff]  }
 0xa02   : > { %3230 = vmatprep.subr.bf16.mxu1 %v4443_v11  ;;  %v4474_v11 = vld [vmem:[#allocation11 + $0x120] ss:$8 sps:$4 sm:$0xff]  }
 0xa05   : > { %3231 = vmatpush1.bf16.msra.mxu1 %v4441_v12  ;;  %v4479_v12 = vld [vmem:[#allocation11 + $0x134] ss:$8 sps:$4 sm:$0xff]  }
 0xa06   : > { %3232 = vmatprep.subr.bf16.mxu1 %v4446_v13  ;;  %v4477_v13 = vld [vmem:[#allocation11 + $0x130] ss:$8 sps:$4 sm:$0xff]  }
 0xa09   : > { %3233 = vmatpush1.bf16.msra.mxu1 %v4444_v14  ;;  %v4482_v14 = vld [vmem:[#allocation11 + $0x144] ss:$8 sps:$4 sm:$0xff]  }
 0xa0a   : > { %3234 = vmatprep.subr.bf16.mxu1 %v4449_v29  ;;  %v4480_v29 = vld [vmem:[#allocation11 + $0x140] ss:$8 sps:$4 sm:$0xff]  }
 0xa0d   : > { %3235 = vmatpush1.bf16.msra.mxu1 %v4447_v15  ;;  %v4485_v15 = vld [vmem:[#allocation11 + $0x154] ss:$8 sps:$4 sm:$0xff]  }
 0xa0e   : > { %3236 = vmatprep.subr.bf16.mxu1 %v4452_v16  ;;  %v4483_v16 = vld [vmem:[#allocation11 + $0x150] ss:$8 sps:$4 sm:$0xff]  }
 0xa11   : > { %3237 = vmatpush1.bf16.msra.mxu1 %v4450_v0  ;;  %v4488_v0 = vld [vmem:[#allocation11 + $0x164] ss:$8 sps:$4 sm:$0xff]  }
 0xa12   : > { %3238 = vmatprep.subr.bf16.mxu1 %v4455_v5  ;;  %v4486_v5 = vld [vmem:[#allocation11 + $0x160] ss:$8 sps:$4 sm:$0xff]  }
 0xa15   : > { %3239 = vmatpush1.bf16.msra.mxu1 %v4453_v7  ;;  %v4491_v7 = vld [vmem:[#allocation11 + $0x174] ss:$8 sps:$4 sm:$0xff]  }
 0xa16   : > { %3240 = vmatprep.subr.bf16.mxu1 %v4458_v17  ;;  %v4489_v17 = vld [vmem:[#allocation11 + $0x170] ss:$8 sps:$4 sm:$0xff]  }
 0xa19   : > { %3241 = vmatpush1.bf16.msra.mxu1 %v4456_v18  ;;  %v4494_v18 = vld [vmem:[#allocation11 + $0x184] ss:$8 sps:$4 sm:$0xff]  }
 0xa1a   : > { %3242 = vmatprep.subr.bf16.mxu1 %v4461_v19  ;;  %v4492_v19 = vld [vmem:[#allocation11 + $0x180] ss:$8 sps:$4 sm:$0xff]  }
 0xa1d   : > { %3243 = vmatpush1.bf16.msra.mxu1 %v4459_v22  ;;  %v4497_v22 = vld [vmem:[#allocation11 + $0x194] ss:$8 sps:$4 sm:$0xff]  }
 0xa1e   : > { %3244 = vmatprep.subr.bf16.mxu1 %v4464_v23  ;;  %v4495_v23 = vld [vmem:[#allocation11 + $0x190] ss:$8 sps:$4 sm:$0xff]  }
 0xa21   : > { %3245 = vmatpush1.bf16.msra.mxu1 %v4462_v25  ;;  %v4500_v25 = vld [vmem:[#allocation11 + $0x1a4] ss:$8 sps:$4 sm:$0xff]  }
 0xa22   : > { %3246 = vmatprep.subr.bf16.mxu1 %v4467_v26  ;;  %v4498_v26 = vld [vmem:[#allocation11 + $0x1a0] ss:$8 sps:$4 sm:$0xff]  }
 0xa25   : > { %3247 = vmatpush1.bf16.msra.mxu1 %v4465_v27  ;;  %v4503_v27 = vld [vmem:[#allocation11 + $0x1b4] ss:$8 sps:$4 sm:$0xff]  }
 0xa26   : > { %3259 = vmatprep.subr.bf16.mxu1 %v4470_v28  ;;  %v4501_v28 = vld [vmem:[#allocation11 + $0x1b0] ss:$8 sps:$4 sm:$0xff]  }
 0xabb   : > { %v2756_v35 = vpop.f32.mrb[20].mxu1  ;;  %v2799_v37 = vpop.f32.mrb[28].mxu0 }
 0xabc   : > { %v2757_v42 = vadd.f32 %v2756_v35, %v2385_v21  ;;  %v2800_v36 = vadd.f32 %v2799_v37, %v2393_v30  ;;  %v2758_v39 = vpop.f32.mrb[21].mxu1  ;;  %v2801_v46 = vpop.f32.mrb[29].mxu0  ;;  %v4510_v35 = vld [vmem:[#allocation11 + $0x1e0] ss:$8 sps:$4 sm:$0xff]   ;;  %v4515_v37 = vld [vmem:[#allocation11 + $0x1f4] ss:$8 sps:$4 sm:$0xff]  }
 0xabd   : > { %v2759_v49 = vadd.f32 %v2758_v39, %v2389_v31  ;;  %v2802_v51 = vadd.f32 %v2801_v46, %v2397_v33  ;;  %v2760_v32 = vpop.f32.mrb[22].mxu1  ;;  %v2803_v38 = vpop.f32.mrb[30].mxu0 }
 0xabe   : > { %v2761_v52 = vadd.f32 %v2760_v32, %v2385_v21  ;;  %v2804_v53 = vadd.f32 %v2803_v38, %v2393_v30  ;;  %v2762_v48 = vpop.f32.mrb[23].mxu1  ;;  %v2805_v55 = vpop.f32.mrb[31].mxu0  ;;  %v2808_v59 = vmax.f32 %v2757_v42, 0.0  ;;  %v2810_v60 = vmax.f32 %v2800_v36, 0.0  ;;  %v4504_v21 = vld [vmem:[#allocation11 + $0x1c0] ss:$8 sps:$4 sm:$0xff]  }
 0xabf   : > { %v2763_v41 = vadd.f32 %v2762_v48, %v2389_v31  ;;  %v2806_v58 = vadd.f32 %v2805_v55, %v2397_v33  ;;  %v2809_v62 = vmax.f32 %v2759_v49, 0.0  ;;  %v2811_v63 = vmax.f32 %v2802_v51, 0.0  ;;  %v4509_v30 = vld [vmem:[#allocation11 + $0x1d4] ss:$8 sps:$4 sm:$0xff]   ;;  %v4507_v31 = vld [vmem:[#allocation11 + $0x1d0] ss:$8 sps:$4 sm:$0xff]  }
 0xac0   : > { %v2812_v40 = vmax.f32 %v2761_v52, 0.0  ;;  %v2814_v43 = vmax.f32 %v2804_v53, 0.0  ;;  %v4512_v33 = vld [vmem:[#allocation11 + $0x1e4] ss:$8 sps:$4 sm:$0xff]   ;;  %v4513_v42 = vld [vmem:[#allocation11 + $0x1f0] ss:$8 sps:$4 sm:$0xff]  }
 0xac1   : > { %v2813_v1 = vmax.f32 %v2763_v41, 0.0  ;;  %v2815_v2 = vmax.f32 %v2806_v58, 0.0  ;;  %v2884_v36 = vld [vmem:[#allocation13] sm:$0x3] }
 0xac2   : > { %v2816_v3 = vpack.c.bf16 %v2812_v40, %v2808_v59  ;;  %v5599_v61 = vpack.c.bf16 %v2814_v43, %v2810_v60  ;;  %v2889_v39 = vrot.slane %v2884_v36, %v5367_v44  ;;  %v2893_v46 = vrot.slane %v2884_v36, %v5370_v45 }
 0xac3   : > { %v2817_v4 = vpack.c.bf16 %v2813_v1, %v2809_v62  ;;  %v2819_v6 = vpack.c.bf16 %v2815_v2, %v2811_v63 }
 0xac5   : > { %3248 = vmatprep.mubr.bf16.mxu1 %v2817_v4 }
 0xac6   : > { %3249 = vmatmul.mubr.bf16.vlgmr.msra.gmra.mrb[24].mxu1 %v2816_v3 }
 0xac7   : > { %3260 = vmatpush1.bf16.msra.mxu1 %v4468_v8  ;;  %3291 = vmatprep.mubr.bf16.mxu1 %v2819_v6 }
 0xac8   : > { %3261 = vmatprep.subr.bf16.mxu1 %v4473_v9 }
 0xacb   : > { %3262 = vmatpush1.bf16.msra.mxu1 %v4471_v10 }
 0xacc   : > { %3263 = vmatprep.subr.bf16.mxu1 %v4476_v24 }
 0xacf   : > { %3264 = vmatpush1.bf16.msra.mxu1 %v4474_v11 }
 0xad0   : > { %3265 = vmatprep.subr.bf16.mxu1 %v4479_v12 }
 0xad3   : > { %3266 = vmatpush1.bf16.msra.mxu1 %v4477_v13 }
 0xad4   : > { %3267 = vmatprep.subr.bf16.mxu1 %v4482_v14 }
 0xad7   : > { %3268 = vmatpush1.bf16.msra.mxu1 %v4480_v29  ;;  %v3338_v29 = vld [vmem:[#allocation14] sm:$0x3] }
 0xad8   : > { %3269 = vmatprep.subr.bf16.mxu1 %v4485_v15  ;;  %v3354_v15 = vld [vmem:[#allocation16] sm:$0x3] }
 0xadb   : > { %3270 = vmatpush1.bf16.msra.mxu1 %v4483_v16  ;;  %v3343_v16 = vrot.slane %v3338_v29, %v5367_v44 }
 0xadc   : > { %3271 = vmatprep.subr.bf16.mxu1 %v4488_v0  ;;  %v3347_v0 = vrot.slane %v3338_v29, %v5370_v45 }
 0xadf   : > { %3272 = vmatpush1.bf16.msra.mxu1 %v4486_v5 }
 0xae0   : > { %3273 = vmatprep.subr.bf16.mxu1 %v4491_v7  ;;  %v3359_v7 = vrot.slane %v3354_v15, %v5367_v44 }
 0xae3   : > { %3274 = vmatpush1.bf16.msra.mxu1 %v4489_v17  ;;  %v3363_v17 = vrot.slane %v3354_v15, %v5370_v45 }
 0xae4   : > { %3275 = vmatprep.subr.bf16.mxu1 %v4494_v18 }
 0xae7   : > { %3276 = vmatpush1.bf16.msra.mxu1 %v4492_v19 }
 0xae8   : > { %3277 = vmatprep.subr.bf16.mxu1 %v4497_v22 }
 0xaeb   : > { %3278 = vmatpush1.bf16.msra.mxu1 %v4495_v23 }
 0xaec   : > { %3279 = vmatprep.subr.bf16.mxu1 %v4500_v25 }
 0xaef   : > { %3280 = vmatpush1.bf16.msra.mxu1 %v4498_v26 }
 0xaf0   : > { %3281 = vmatprep.subr.bf16.mxu1 %v4503_v27 }
 0xaf3   : > { %3282 = vmatpush1.bf16.msra.mxu1 %v4501_v28 }
 0xaf4   : > { %3283 = vmatprep.subr.bf16.mxu1 %v4506_v20 }
 0xaf7   : > { %3284 = vmatpush1.bf16.msra.mxu1 %v4504_v21 }
 0xaf8   : > { %3285 = vmatprep.subr.bf16.mxu1 %v4509_v30 }
 0xafb   : > { %3286 = vmatpush1.bf16.msra.mxu1 %v4507_v31 }
 0xafc   : > { %3287 = vmatprep.subr.bf16.mxu1 %v4512_v33 }
 0xaff   : > { %3288 = vmatpush1.bf16.msra.mxu1 %v4510_v35 }
 0xb00   : > { %3289 = vmatprep.subr.bf16.mxu1 %v4515_v37 }
 0xb03   : > { %3290 = vmatpush1.bf16.msra.mxu1 %v4513_v42 }
 0xb06   : > { %3292 = vmatmul.mubr.bf16.vlgmr.msra.gmra.mrb[24].mxu1 %v5599_v61 }
 0xbd9   : > { %v3293_v49 = vpop.f32.mrb[24].mxu1 }
 0xbda   : > { %v3973_v51 = vadd.f32 %v3293_v49, %v2889_v39  ;;  %v3295_v32 = vpop.f32.mrb[25].mxu1 }
 0xbdb   : > { %v3974_v38 = vadd.f32 %v3295_v32, %v2893_v46  ;;  %v3297_v52 = vpop.f32.mrb[26].mxu1 }
 0xbdc   : > { %v3302_v53 = vadd.f32 %v3973_v51, %v5575_v56  ;;  %v3975_v48 = vadd.f32 %v3297_v52, %v2889_v39  ;;  %v3299_v55 = vpop.f32.mrb[27].mxu1 }
 0xbdd   : > { %v3303_v41 = vadd.f32 %v3974_v38, %v5578_v57  ;;  %v3976_v58 = vadd.f32 %v3299_v55, %v2893_v46 }
 0xbde   : > { %v3304_v59 = vadd.f32 %v3975_v48, %v5581_v34 }
 0xbdf   : > { %v3305_v60 = vadd.f32 %v3976_v58, %v5584_v50  ;;  %v3306_v40 = vadd.f32 %v3303_v41, %v3302_v53 }
 0xbe1   : > { %3307 = vadd.xlane.f32.xlu1 %v3306_v40  ;;  %v3309_v43 = vadd.f32 %v3305_v60, %v3304_v59 }
 0xbe3   : > { %3310 = vadd.xlane.f32.xlu0 %v3309_v43 }
 0xc6e   : > { %v3308_v62 = vpop.xlane.xlu1 %3307 }
 0xc6f   : > { %v3312_v63 = vmul.f32 0.00390625, %v3308_v62 }
 0xc70   : > { %v3311_v1 = vpop.xlane.xlu0 %3310 }
 0xc71   : > { %v3314_v2 = vsub.f32 %v3302_v53, %v3312_v63  ;;  %v3315_v3 = vsub.f32 %v3303_v41, %v3312_v63  ;;  %v3313_v61 = vmul.f32 0.00390625, %v3311_v1 }
 0xc73   : > { %v3316_v56 = vsub.f32 %v3304_v59, %v3313_v61  ;;  %v3317_v4 = vsub.f32 %v3305_v60, %v3313_v61  ;;  %v3318_v6 = vmul.f32 %v3314_v2, %v3314_v2  ;;  %v3319_v8 = vmul.f32 %v3315_v3, %v3315_v3 }
 0xc75   : > { %v3322_v57 = vadd.f32 %v3319_v8, %v3318_v6  ;;  %v3320_v9 = vmul.f32 %v3316_v56, %v3316_v56  ;;  %v3321_v10 = vmul.f32 %v3317_v4, %v3317_v4 }
 0xc77   : > { %3323 = vadd.xlane.f32.xlu1 %v3322_v57  ;;  %v3325_v34 = vadd.f32 %v3321_v10, %v3320_v9 }
 0xc7b   : > { %3326 = vadd.xlane.f32.xlu1 %v3325_v34 }
 0xd04   : > { %v3324_v50 = vpop.xlane.xlu1 %3323 }
 0xd05   : > { %v3328_v24 = vmul.f32 0.00390625, %v3324_v50 }
 0xd07   : > { %v3330_v11 = vadd.f32 1e-05, %v3328_v24 }
 0xd08   : > { %v3327_v12 = vpop.xlane.xlu1 %3326 }
 0xd09   : > { %4552 = vrsqrt.f32 %v3330_v11  ;;  %v3329_v13 = vmul.f32 0.00390625, %v3327_v12 }
 0xd0b   : > { %v3331_v14 = vadd.f32 1e-05, %v3329_v13 }
 0xd0d   : > { %4554 = vrsqrt.f32 %v3331_v14 }
 0xd13   : > { %v4553_v5 = vpop.eup %4552 }
 0xd14   : > { %v3334_v18 = vmul.f32 %v4553_v5, %v3314_v2  ;;  %v3335_v19 = vmul.f32 %v4553_v5, %v3315_v3 }
 0xd16   : > { %v3350_v22 = vmul.f32 %v3343_v16, %v3334_v18  ;;  %v3351_v23 = vmul.f32 %v3347_v0, %v3335_v19 }
 0xd17   : > { %v4555_v25 = vpop.eup %4554 }
 0xd18   : > { %v3366_v26 = vadd.f32 %v3359_v7, %v3350_v22  ;;  %v3367_v27 = vadd.f32 %v3363_v17, %v3351_v23  ;;  %v3336_v28 = vmul.f32 %v4555_v25, %v3316_v56  ;;  %v3337_v20 = vmul.f32 %v4555_v25, %v3317_v4 }
 0xd1a   : > { %v3370_v21 = vmul.f32 %v3366_v26, %v5570_v54  ;;  %v3371_v30 = vmul.f32 %v3367_v27, %v5570_v54  ;;  %v3352_v31 = vmul.f32 %v3343_v16, %v3336_v28  ;;  %v3353_v44 = vmul.f32 %v3347_v0, %v3337_v20 }
 0xd1c   : > { %3374 = vst [vmem:[%s678_s6] sm:$0xff] %v3370_v21  ;;  %3375 = vst [vmem:[%s678_s6 + $0x8] sm:$0xff] %v3371_v30  ;;  %v3368_v45 = vadd.f32 %v3359_v7, %v3352_v31  ;;  %v3369_v33 = vadd.f32 %v3363_v17, %v3353_v44 }
 0xd1e   : > { %v3372_v54 = vmul.f32 %v3368_v45, %v5572_v47  ;;  %v3373_v35 = vmul.f32 %v3369_v33, %v5572_v47 }
 0xd20   : > { %3376 = vst [vmem:[%s678_s6 + $0x10] sm:$0xff] %v3372_v54  ;;  %3377 = vst [vmem:[%s678_s6 + $0x18] sm:$0xff] %v3373_v35 }
 0xd21   : > { %4827 = shalt.err (!%p4824_p4)
}
 0xd22   : > { %s4828_s3 = scalar_lea.hbm %s5619_s2, 512  ;;  %s4832_s8 = scalar_lea.hbm %s5725_s19, 1024 }
 0xd23   : > { %p4829_p3 = scmp.ne.s32.totalorder %s5619_s2, %s4828_s3  ;;  %p4833_p6 = scmp.lt.u32.totalorder %s5619_s2, %s5725_s19 }
 0xd24   : > { %p4834_p5 = scmp.lt.u32.totalorder %s4832_s8, %s4828_s3  ;;  %p4836_p1 = scmp.lt.u32.totalorder %s4828_s3, %s5619_s2 }
 0xd25   : > { %p4830_p0 = pnand %p4829_p3, %p5726_p11 }
 0xd26   : > { %p4835_p10 = por %p4834_p5, %p4833_p6 }
 0xd27   : > { %p4831_p2 = pneg %p4830_p0 }
 0xd28   : > { %p4837_p12 = por %p4836_p1, %p4835_p10 }
 0xd2a   : > { %p4838_p13 = pnand %p4837_p12, %p4831_p2 }
 0xd2c   : > { %4841 = shalt.err (!%p4838_p13)
}
 0xd2d   : > { %s4918_s7 = smov 256   ;;  %s4919_s28 = smov 16  }
 0xd2e   : > { %4015 = dma.vmem_to_hbm [thread:$0]  (%p5726_p11), %s5621_s20, 512, %s5619_s2, %s3379_s27, %s4918_s7, %s4918_s7, %s4919_s28  }
 0xd2f PF: > { %s3415_s0 = sand.u32 1, %s4884_s21   ;;  %p5727_p8 = scmp.ne.s32.totalorder %s5707_s16, 0 }
 0xd30   : > { %p5728_p7 = scmp.ge.s32.totalorder %s4896_s24, 2  ;;  %s3416_s18 = scalar_lea.sflag [#allocation4], %s3415_s0 }
 0xd32   : > { %p4047_p9 = pnand %p5728_p7, %p5727_p8 }
 0xd34   : > { %4879 = dma.done.wait (!%p4047_p9), %s3416_s18, 512  }
 0xd35   : > { %4881 = vsyncadd (!%p4047_p9), %s3416_s18, 4294966784  ;;  %p34_p4 = scmp.ge.s32.totalorder %s5226_s29, 4   ;;  %s5729_s21 = smov %s4888_s22 }
 0xd36   : > { %s5730_s22 = smov %s4892_s23  ;;  %s5731_s23 = smov %s5237_s17 }
 0xd37   : > { %s5732_s24 = smov %s5226_s29  ;;  %36 = sbr.rel (!%p34_p4) target bundleno = 20 (0x14), region = 178 }
 0xd3e   :  { %3429 = vsyncpa [#allocation3], 1 }
 0xd3f   :  { %3431 = vsyncpa [#allocation3 + $0x1], 1 }
 0xd40   :  { %3432 = vsyncpa [#allocation6], 1 }
 0xd41   :  { %3433 = vsyncpa [#allocation9], 1 }
 0xd42   :  { %3434 = vsyncpa [#allocation12], 1 }
 0xd43   :  { %3435 = vsyncpa [#allocation15], 1 }
 0xd44   :  { %3436 = vsyncpa [#allocation4], 1 }
 0xd45   :  { %3438 = vsyncpa [#allocation4 + $0x1], 1 }

</bundles_post_ra>
